<compile_context>
chip_gen: v5e
topology: v5e:2x2
jax: 0.10.0
libtpu: 0.0.40
codegen_flags: <defaults>
</compile_context>

<pallas_src>
import jax
import jax.numpy as jnp
from jax.experimental import pallas as pl
from jax.experimental.pallas import tpu as pltpu


def _round_up(x, m):
    return (x + m - 1) // m * m


def _tpu_vmem_capacity_bytes():
    try:
        info = pltpu.get_tpu_info()
        cap = int(getattr(info, "vmem_capacity_bytes", 0))
        if cap > 0:
            return cap
    except Exception:
        pass
    return 64 << 20  # conservative default (v7x per-TensorCore VMEM)


def _plan_blocks(B, N, C, C_pad, num_heads, compute_dtype, weight_bytes):
    """VMEM-aware batch block size + vmem limit."""
    item = jnp.dtype(compute_dtype).itemsize
    hd = C // num_heads
    # per-sample footprint: double-buffered in/out tiles + dominant in-kernel
    # intermediates (f32 qkv, f32 accumulator, per-head f32 scores/exp,
    # compute-dtype qkv copy).  1.5x fudge for layout padding / vregs.
    io = 2 * N * C * item + 2 * N * C_pad * item
    interm = 4 * (3 * N * C + N * C_pad + 2 * N * N + 4 * N * hd) + item * 3 * N * C
    per_sample = io + int(1.5 * interm)

    capacity = _tpu_vmem_capacity_bytes()
    budget = int(0.70 * capacity) - weight_bytes
    cap = max(1, budget // max(per_sample, 1))
    # Keep >=2 grid steps when possible: lets the "parallel" batch axis shard
    # across v7x's 2 TensorCores; extra-step cost on 1-TC chips is ~0.35 us.
    if B >= 2:
        cap = min(cap, max(1, B // 2))
    block_b = max(1, min(cap, B))
    while B % block_b:
        block_b -= 1
    need = weight_bytes + per_sample * block_b
    vmem_limit = int(min(int(0.85 * capacity), max(32 << 20, 2 * need)))
    return block_b, vmem_limit


def attention_forward(x, params, *, num_heads, qk_scale=None,
                      compute_dtype=None, block_b=None):
    """Pallas forward pass of the PyTorch Attention module (eval mode)."""
    B, N, C = x.shape
    assert C % num_heads == 0, "dim must be divisible by num_heads"
    head_dim = C // num_heads
    scale = float(qk_scale) if qk_scale else head_dim ** (-0.5)

    out_dtype = x.dtype
    cdtype = jnp.dtype(compute_dtype) if compute_dtype is not None else jnp.dtype(x.dtype)

    # ---------------- host-side parameter prep (PyTorch -> kernel layout) ----
    # nn.Linear stores W as (out, in); pre-transpose so the kernel does plain
    # x @ W (output channels land in lanes).  Also reorder the fused-QKV output
    # channels from [q|k|v][head][hd] to [head][q|k|v][hd] so each head is ONE
    # contiguous lane slice.
    w_qkv = jnp.asarray(params["w_qkv"])            # (3C, C)
    w_proj = jnp.asarray(params["w_proj"])          # (C, C)
    b_proj = jnp.asarray(params["b_proj"])          # (C,)
    b_qkv = params.get("b_qkv", None)

    w_qkv_t = w_qkv.T.reshape(C, 3, num_heads, head_dim)
    w_qkv_t = w_qkv_t.transpose(0, 2, 1, 3).reshape(C, 3 * C).astype(cdtype)

    has_qkv_bias = b_qkv is not None
    if has_qkv_bias:
        b_qkv_r = jnp.asarray(b_qkv).reshape(3, num_heads, head_dim)
        b_qkv_r = b_qkv_r.transpose(1, 0, 2).reshape(1, 3 * C).astype(jnp.float32)

    # Lane-dense output: pad proj OUTPUT channels (+bias, +out buffer) to a
    # multiple of 128 so stores are unmasked vst; slice padding off outside.
    C_pad = _round_up(C, 128)
    w_proj_t = w_proj.T.astype(cdtype)                              # (C, C)
    if C_pad != C:
        w_proj_t = jnp.pad(w_proj_t, ((0, 0), (0, C_pad - C)))
        b_proj_p = jnp.pad(b_proj.astype(jnp.float32), (0, C_pad - C)).reshape(1, C_pad)
    else:
        b_proj_p = b_proj.astype(jnp.float32).reshape(1, C_pad)

    x_c = x.astype(cdtype)

    # ---------------- block planning ----------------------------------------
    wbytes_qkv = int(w_qkv_t.size) * w_qkv_t.dtype.itemsize
    wbytes_proj = int(w_proj_t.size) * w_proj_t.dtype.itemsize
    # Constant-index weight blocks don't need double buffering; only bother
    # when they're big enough to matter (protects v5e's small scoped VMEM).
    single_buffer_weights = (wbytes_qkv + wbytes_proj > (1 << 20)) and hasattr(pl, "Buffered")
    wfactor = 1 if single_buffer_weights else 2
    weight_bytes = wfactor * (wbytes_qkv + wbytes_proj) + 4 * (3 * C + C_pad)

    auto_block_b, vmem_limit = _plan_blocks(B, N, C, C_pad, num_heads, cdtype, weight_bytes)
    if block_b is None:
        block_b = auto_block_b
    assert B % block_b == 0, "block_b must divide batch"
    rows = block_b * N
    # NOTE: the (block_b, N, C) -> (rows, C) reshape is free when N % 8 == 0;
    # otherwise it may materialize a relayout copy (correctness unaffected).

    # ---------------- kernel -------------------------------------------------
    def kernel(*refs):
        if has_qkv_bias:
            x_ref, wqkv_ref, bqkv_ref, wproj_ref, bproj_ref, o_ref = refs
        else:
            x_ref, wqkv_ref, wproj_ref, bproj_ref, o_ref = refs

        xf = x_ref[...].reshape(rows, C)                 # compute dtype, no upcast
        # Fused QKV projection: one (rows, C) @ (C, 3C) MXU matmul, f32 acc.
        qkv_f32 = jnp.dot(xf, wqkv_ref[...], preferred_element_type=jnp.float32)
        if has_qkv_bias:
            qkv_f32 = qkv_f32 + bqkv_ref[...]
        qkv = qkv_f32.astype(xf.dtype).reshape(block_b, N, 3 * C)

        acc = jnp.zeros((rows, C_pad), jnp.float32)
        for h in range(num_heads):
            base = 3 * head_dim * h                      # [head][q|k|v][hd] layout
            q_h = qkv[:, :, base:base + head_dim]
            k_h = qkv[:, :, base + head_dim:base + 2 * head_dim]
            v_h = qkv[:, :, base + 2 * head_dim:base + 3 * head_dim]

            # Scores / softmax stay in f32; MXU sees compute-dtype operands.
            s = jnp.einsum("bqd,bkd->bqk", q_h, k_h,
                           preferred_element_type=jnp.float32) * scale
            s = s - jnp.max(s, axis=-1, keepdims=True)
            e = jnp.exp(s)
            p = e / jnp.sum(e, axis=-1, keepdims=True)
            # attn_drop is identity (p=0.0 / eval mode).

            ctx = jnp.einsum("bqk,bkd->bqd", p.astype(qkv.dtype), v_h,
                             preferred_element_type=jnp.float32)
            # Per-head output projection accumulation (replaces concat + dot).
            acc = acc + jnp.dot(
                ctx.reshape(rows, head_dim).astype(qkv.dtype),
                wproj_ref[h * head_dim:(h + 1) * head_dim, :],
                preferred_element_type=jnp.float32)

        y = acc + bproj_ref[...]                         # proj bias (f32)
        o_ref[...] = y.reshape(block_b, N, C_pad).astype(o_ref.dtype)

    # ---------------- specs / pallas_call ------------------------------------
    def _full_spec(shape, single_buffer=False):
        idx = lambda b, _n=len(shape): (0,) * _n
        if single_buffer:
            return pl.BlockSpec(shape, idx, pipeline_mode=pl.Buffered(1))
        return pl.BlockSpec(shape, idx)

    in_specs = [pl.BlockSpec((block_b, N, C), lambda b: (b, 0, 0))]
    inputs = [x_c]
    in_specs.append(_full_spec((C, 3 * C), single_buffer_weights))
    inputs.append(w_qkv_t)
    if has_qkv_bias:
        in_specs.append(_full_spec((1, 3 * C)))
        inputs.append(b_qkv_r)
    in_specs.append(_full_spec((C, C_pad), single_buffer_weights))
    inputs.append(w_proj_t)
    in_specs.append(_full_spec((1, C_pad)))
    inputs.append(b_proj_p)

    out_specs = pl.BlockSpec((block_b, N, C_pad), lambda b: (b, 0, 0))

    H = num_heads
    flops = (2 * B * N * C * 3 * C            # qkv projection
             + 4 * B * H * N * N * head_dim   # scores + context
             + 2 * B * N * C * C_pad)         # output projection
    bytes_accessed = (int(x_c.size) * x_c.dtype.itemsize
                      + B * N * C_pad * jnp.dtype(out_dtype).itemsize
                      + wbytes_qkv + wbytes_proj
                      + (3 * C * 4 if has_qkv_bias else 0) + C_pad * 4)
    cost = pl.CostEstimate(flops=int(flops),
                           transcendentals=int(B * H * N * N),
                           bytes_accessed=int(bytes_accessed))

    out = pl.pallas_call(
        kernel,
        out_shape=jax.ShapeDtypeStruct((B, N, C_pad), out_dtype),
        grid_spec=pltpu.PrefetchScalarGridSpec(
            num_scalar_prefetch=0,
            grid=(B // block_b,),
            in_specs=in_specs,
            out_specs=out_specs,
        ),
        compiler_params=pltpu.CompilerParams(
            dimension_semantics=("parallel",),
            vmem_limit_bytes=vmem_limit),
        cost_estimate=cost,
    )(*inputs)

    return out[:, :, :C] if C_pad != C else out


def attention_reference(x, params, num_heads, qk_scale=None):
    """Pure-JAX reference matching the PyTorch forward (eval mode)."""
    B, N, C = x.shape
    hd = C // num_heads
    scale = qk_scale if qk_scale else hd ** (-0.5)

    qkv = jnp.einsum("bnc,oc->bno", x, params["w_qkv"])
    if params.get("b_qkv", None) is not None:
        qkv = qkv + params["b_qkv"]
    qkv = qkv.reshape(B, N, 3, num_heads, hd).transpose(2, 0, 3, 1, 4)
    q, k, v = qkv[0], qkv[1], qkv[2]

    attn = jnp.einsum("bhqd,bhkd->bhqk", q, k) * scale
    attn = jax.nn.softmax(attn, axis=-1)
    out = jnp.einsum("bhqk,bhkd->bhqd", attn, v)
    out = out.transpose(0, 2, 1, 3).reshape(B, N, C)
    return jnp.einsum("bnc,oc->bno", out, params["w_proj"]) + params["b_proj"]


if __name__ == "__main__":
    # Shapes implied by the module: num_heads=7 -> dim must be a multiple of 7.
    B, N, num_heads = 4, 8, 7
    C = 28                       # head_dim = 4
    key = jax.random.PRNGKey(0)
    k0, k1, k2, k3 = jax.random.split(key, 4)

    x = jax.random.normal(k0, (B, N, C), dtype=jnp.float32)
    params = {
        # PyTorch nn.Linear layout: (out_features, in_features)
        "w_qkv": 0.2 * jax.random.normal(k1, (3 * C, C), dtype=jnp.float32),
        "b_qkv": None,           # qkv_bias=False (module default)
        "w_proj": 0.2 * jax.random.normal(k2, (C, C), dtype=jnp.float32),
        "b_proj": 0.05 * jax.random.normal(k3, (C,), dtype=jnp.float32),
    }

    ref = attention_reference(x, params, num_heads)

    # Strict correctness check: f32 compute path.
    out_f32 = jax.block_until_ready(
        attention_forward(x, params, num_heads=num_heads, compute_dtype=jnp.float32))
    assert out_f32.shape == (B, N, C)
    err32 = jnp.max(jnp.abs(out_f32 - ref))
    assert jnp.allclose(out_f32, ref, atol=2e-3, rtol=2e-3), f"f32 max abs err {err32}"

    # Fast path: bf16 MXU operands with f32 accumulation / softmax.
    out_bf16 = jax.block_until_ready(
        attention_forward(x, params, num_heads=num_heads, compute_dtype=jnp.bfloat16))
    assert out_bf16.shape == (B, N, C)
    err_bf = jnp.max(jnp.abs(out_bf16 - ref))
    assert err_bf < 0.2, f"bf16 max abs err {err_bf}"   # loose: bf16 input rounding

    print("KERNEL_OK")
</pallas_src>

<mosaic_0001>
module attributes {stable_mosaic.version = 11 : i64} {
  func.func @kernel(%arg0: i32, %arg1: memref<2x8x28xf32, #tpu.memory_space<vmem>>, %arg2: memref<28x84xf32, #tpu.memory_space<vmem>>, %arg3: memref<28x128xf32, #tpu.memory_space<vmem>>, %arg4: memref<1x128xf32, #tpu.memory_space<vmem>>, %arg5: memref<2x8x128xf32, #tpu.memory_space<vmem>>) attributes {dimension_semantics = [#tpu.dimension_semantics<parallel>], iteration_bounds = array<i64: 2>, scalar_prefetch = 0 : i64, scratch_operands = 0 : i64, tpu.core_type = #tpu.core_type<tc>, window_params = [{transform_indices = @transform_0, window_bounds = array<i64: 2, 8, 28>}, {pipeline_mode = #tpu.pipeline_mode<synchronous>, transform_indices = @transform_1, window_bounds = array<i64: 28, 84>}, {pipeline_mode = #tpu.pipeline_mode<synchronous>, transform_indices = @transform_2, window_bounds = array<i64: 28, 128>}, {pipeline_mode = #tpu.pipeline_mode<synchronous>, transform_indices = @transform_3, window_bounds = array<i64: 1, 128>}, {transform_indices = @transform_4, window_bounds = array<i64: 2, 8, 128>}]} {
    %c0 = arith.constant 0 : index
    %c0_0 = arith.constant 0 : index
    %c0_1 = arith.constant 0 : index
    %0 = vector.load %arg1[%c0, %c0_0, %c0_1] : memref<2x8x28xf32, #tpu.memory_space<vmem>>, vector<2x8x28xf32>
    %1 = vector.shape_cast %0 : vector<2x8x28xf32> to vector<16x28xf32>
    %c0_2 = arith.constant 0 : index
    %c0_3 = arith.constant 0 : index
    %2 = vector.load %arg2[%c0_2, %c0_3] : memref<28x84xf32, #tpu.memory_space<vmem>>, vector<28x84xf32>
    %cst = arith.constant dense<0.000000e+00> : vector<16x84xf32>
    %3 = tpu.matmul %1, %2, %cst {dimension_numbers = #tpu.dot_dimension_numbers<[1], [0], [0], [1], [0, 0, 1, 1], [], []>} : vector<16x28xf32>, vector<28x84xf32>, vector<16x84xf32> -> vector<16x84xf32>
    %4 = vector.shape_cast %3 : vector<16x84xf32> to vector<2x8x84xf32>
    %cst_4 = arith.constant 0.000000e+00 : f32
    %5 = vector.broadcast %cst_4 : f32 to vector<16x128xf32>
    %6 = vector.extract_strided_slice %4 {offsets = [0, 0, 0], sizes = [2, 8, 4], strides = [1, 1, 1]} : vector<2x8x84xf32> to vector<2x8x4xf32>
    %7 = vector.extract_strided_slice %4 {offsets = [0, 0, 4], sizes = [2, 8, 4], strides = [1, 1, 1]} : vector<2x8x84xf32> to vector<2x8x4xf32>
    %8 = vector.extract_strided_slice %4 {offsets = [0, 0, 8], sizes = [2, 8, 4], strides = [1, 1, 1]} : vector<2x8x84xf32> to vector<2x8x4xf32>
    "tpu.trace_start"() <{level = 10 : i32, message = "bqd,bkd->bqk"}> : () -> ()
    %cst_5 = arith.constant dense<0.000000e+00> : vector<2x8x8xf32>
    %9 = tpu.matmul %6, %7, %cst_5 {dimension_numbers = #tpu.dot_dimension_numbers<[2], [2], [1], [1], [0, 0, 0, 1, 1, 1], [0], [0]>} : vector<2x8x4xf32>, vector<2x8x4xf32>, vector<2x8x8xf32> -> vector<2x8x8xf32>
    "tpu.trace_stop"() : () -> ()
    %cst_6 = arith.constant 5.000000e-01 : f32
    %10 = vector.broadcast %cst_6 : f32 to vector<2x8x8xf32>
    %11 = arith.mulf %9, %10 : vector<2x8x8xf32>
    %cst_7 = arith.constant dense<0xFF800000> : vector<2x8xf32>
    %12 = vector.multi_reduction <maximumf>, %11, %cst_7 [2] : vector<2x8x8xf32> to vector<2x8xf32>
    %13 = vector.shape_cast %12 : vector<2x8xf32> to vector<2x8x1xf32>
    %14 = vector.broadcast %13 : vector<2x8x1xf32> to vector<2x8x8xf32>
    %15 = arith.subf %11, %14 : vector<2x8x8xf32>
    %16 = math.exp %15 : vector<2x8x8xf32>
    %cst_8 = arith.constant dense<0.000000e+00> : vector<2x8xf32>
    %17 = vector.multi_reduction <add>, %16, %cst_8 [2] : vector<2x8x8xf32> to vector<2x8xf32>
    %18 = vector.shape_cast %17 : vector<2x8xf32> to vector<2x8x1xf32>
    %19 = vector.broadcast %18 : vector<2x8x1xf32> to vector<2x8x8xf32>
    %20 = arith.divf %16, %19 : vector<2x8x8xf32>
    "tpu.trace_start"() <{level = 10 : i32, message = "bqk,bkd->bqd"}> : () -> ()
    %cst_9 = arith.constant dense<0.000000e+00> : vector<2x8x4xf32>
    %21 = tpu.matmul %20, %8, %cst_9 {dimension_numbers = #tpu.dot_dimension_numbers<[2], [1], [1], [2], [0, 0, 0, 1, 1, 2], [0], [0]>} : vector<2x8x8xf32>, vector<2x8x4xf32>, vector<2x8x4xf32> -> vector<2x8x4xf32>
    "tpu.trace_stop"() : () -> ()
    %22 = vector.shape_cast %21 : vector<2x8x4xf32> to vector<16x4xf32>
    %c0_10 = arith.constant 0 : index
    %c0_11 = arith.constant 0 : index
    %23 = vector.load %arg3[%c0_10, %c0_11] : memref<28x128xf32, #tpu.memory_space<vmem>>, vector<4x128xf32>
    %cst_12 = arith.constant dense<0.000000e+00> : vector<16x128xf32>
    %24 = tpu.matmul %22, %23, %cst_12 {dimension_numbers = #tpu.dot_dimension_numbers<[1], [0], [0], [1], [0, 0, 1, 1], [], []>} : vector<16x4xf32>, vector<4x128xf32>, vector<16x128xf32> -> vector<16x128xf32>
    %25 = arith.addf %5, %24 : vector<16x128xf32>
    %26 = vector.extract_strided_slice %4 {offsets = [0, 0, 12], sizes = [2, 8, 4], strides = [1, 1, 1]} : vector<2x8x84xf32> to vector<2x8x4xf32>
    %27 = vector.extract_strided_slice %4 {offsets = [0, 0, 16], sizes = [2, 8, 4], strides = [1, 1, 1]} : vector<2x8x84xf32> to vector<2x8x4xf32>
    %28 = vector.extract_strided_slice %4 {offsets = [0, 0, 20], sizes = [2, 8, 4], strides = [1, 1, 1]} : vector<2x8x84xf32> to vector<2x8x4xf32>
    "tpu.trace_start"() <{level = 10 : i32, message = "bqd,bkd->bqk"}> : () -> ()
    %cst_13 = arith.constant dense<0.000000e+00> : vector<2x8x8xf32>
    %29 = tpu.matmul %26, %27, %cst_13 {dimension_numbers = #tpu.dot_dimension_numbers<[2], [2], [1], [1], [0, 0, 0, 1, 1, 1], [0], [0]>} : vector<2x8x4xf32>, vector<2x8x4xf32>, vector<2x8x8xf32> -> vector<2x8x8xf32>
    "tpu.trace_stop"() : () -> ()
    %cst_14 = arith.constant 5.000000e-01 : f32
    %30 = vector.broadcast %cst_14 : f32 to vector<2x8x8xf32>
    %31 = arith.mulf %29, %30 : vector<2x8x8xf32>
    %cst_15 = arith.constant dense<0xFF800000> : vector<2x8xf32>
    %32 = vector.multi_reduction <maximumf>, %31, %cst_15 [2] : vector<2x8x8xf32> to vector<2x8xf32>
    %33 = vector.shape_cast %32 : vector<2x8xf32> to vector<2x8x1xf32>
    %34 = vector.broadcast %33 : vector<2x8x1xf32> to vector<2x8x8xf32>
    %35 = arith.subf %31, %34 : vector<2x8x8xf32>
    %36 = math.exp %35 : vector<2x8x8xf32>
    %cst_16 = arith.constant dense<0.000000e+00> : vector<2x8xf32>
    %37 = vector.multi_reduction <add>, %36, %cst_16 [2] : vector<2x8x8xf32> to vector<2x8xf32>
    %38 = vector.shape_cast %37 : vector<2x8xf32> to vector<2x8x1xf32>
    %39 = vector.broadcast %38 : vector<2x8x1xf32> to vector<2x8x8xf32>
    %40 = arith.divf %36, %39 : vector<2x8x8xf32>
    "tpu.trace_start"() <{level = 10 : i32, message = "bqk,bkd->bqd"}> : () -> ()
    %cst_17 = arith.constant dense<0.000000e+00> : vector<2x8x4xf32>
    %41 = tpu.matmul %40, %28, %cst_17 {dimension_numbers = #tpu.dot_dimension_numbers<[2], [1], [1], [2], [0, 0, 0, 1, 1, 2], [0], [0]>} : vector<2x8x8xf32>, vector<2x8x4xf32>, vector<2x8x4xf32> -> vector<2x8x4xf32>
    "tpu.trace_stop"() : () -> ()
    %42 = vector.shape_cast %41 : vector<2x8x4xf32> to vector<16x4xf32>
    %c4 = arith.constant 4 : index
    %c0_18 = arith.constant 0 : index
    %43 = vector.load %arg3[%c4, %c0_18] : memref<28x128xf32, #tpu.memory_space<vmem>>, vector<4x128xf32>
    %cst_19 = arith.constant dense<0.000000e+00> : vector<16x128xf32>
    %44 = tpu.matmul %42, %43, %cst_19 {dimension_numbers = #tpu.dot_dimension_numbers<[1], [0], [0], [1], [0, 0, 1, 1], [], []>} : vector<16x4xf32>, vector<4x128xf32>, vector<16x128xf32> -> vector<16x128xf32>
    %45 = arith.addf %25, %44 : vector<16x128xf32>
    %46 = vector.extract_strided_slice %4 {offsets = [0, 0, 24], sizes = [2, 8, 4], strides = [1, 1, 1]} : vector<2x8x84xf32> to vector<2x8x4xf32>
    %47 = vector.extract_strided_slice %4 {offsets = [0, 0, 28], sizes = [2, 8, 4], strides = [1, 1, 1]} : vector<2x8x84xf32> to vector<2x8x4xf32>
    %48 = vector.extract_strided_slice %4 {offsets = [0, 0, 32], sizes = [2, 8, 4], strides = [1, 1, 1]} : vector<2x8x84xf32> to vector<2x8x4xf32>
    "tpu.trace_start"() <{level = 10 : i32, message = "bqd,bkd->bqk"}> : () -> ()
    %cst_20 = arith.constant dense<0.000000e+00> : vector<2x8x8xf32>
    %49 = tpu.matmul %46, %47, %cst_20 {dimension_numbers = #tpu.dot_dimension_numbers<[2], [2], [1], [1], [0, 0, 0, 1, 1, 1], [0], [0]>} : vector<2x8x4xf32>, vector<2x8x4xf32>, vector<2x8x8xf32> -> vector<2x8x8xf32>
    "tpu.trace_stop"() : () -> ()
    %cst_21 = arith.constant 5.000000e-01 : f32
    %50 = vector.broadcast %cst_21 : f32 to vector<2x8x8xf32>
    %51 = arith.mulf %49, %50 : vector<2x8x8xf32>
    %cst_22 = arith.constant dense<0xFF800000> : vector<2x8xf32>
    %52 = vector.multi_reduction <maximumf>, %51, %cst_22 [2] : vector<2x8x8xf32> to vector<2x8xf32>
    %53 = vector.shape_cast %52 : vector<2x8xf32> to vector<2x8x1xf32>
    %54 = vector.broadcast %53 : vector<2x8x1xf32> to vector<2x8x8xf32>
    %55 = arith.subf %51, %54 : vector<2x8x8xf32>
    %56 = math.exp %55 : vector<2x8x8xf32>
    %cst_23 = arith.constant dense<0.000000e+00> : vector<2x8xf32>
    %57 = vector.multi_reduction <add>, %56, %cst_23 [2] : vector<2x8x8xf32> to vector<2x8xf32>
    %58 = vector.shape_cast %57 : vector<2x8xf32> to vector<2x8x1xf32>
    %59 = vector.broadcast %58 : vector<2x8x1xf32> to vector<2x8x8xf32>
    %60 = arith.divf %56, %59 : vector<2x8x8xf32>
    "tpu.trace_start"() <{level = 10 : i32, message = "bqk,bkd->bqd"}> : () -> ()
    %cst_24 = arith.constant dense<0.000000e+00> : vector<2x8x4xf32>
    %61 = tpu.matmul %60, %48, %cst_24 {dimension_numbers = #tpu.dot_dimension_numbers<[2], [1], [1], [2], [0, 0, 0, 1, 1, 2], [0], [0]>} : vector<2x8x8xf32>, vector<2x8x4xf32>, vector<2x8x4xf32> -> vector<2x8x4xf32>
    "tpu.trace_stop"() : () -> ()
    %62 = vector.shape_cast %61 : vector<2x8x4xf32> to vector<16x4xf32>
    %c8 = arith.constant 8 : index
    %c0_25 = arith.constant 0 : index
    %63 = vector.load %arg3[%c8, %c0_25] : memref<28x128xf32, #tpu.memory_space<vmem>>, vector<4x128xf32>
    %cst_26 = arith.constant dense<0.000000e+00> : vector<16x128xf32>
    %64 = tpu.matmul %62, %63, %cst_26 {dimension_numbers = #tpu.dot_dimension_numbers<[1], [0], [0], [1], [0, 0, 1, 1], [], []>} : vector<16x4xf32>, vector<4x128xf32>, vector<16x128xf32> -> vector<16x128xf32>
    %65 = arith.addf %45, %64 : vector<16x128xf32>
    %66 = vector.extract_strided_slice %4 {offsets = [0, 0, 36], sizes = [2, 8, 4], strides = [1, 1, 1]} : vector<2x8x84xf32> to vector<2x8x4xf32>
    %67 = vector.extract_strided_slice %4 {offsets = [0, 0, 40], sizes = [2, 8, 4], strides = [1, 1, 1]} : vector<2x8x84xf32> to vector<2x8x4xf32>
    %68 = vector.extract_strided_slice %4 {offsets = [0, 0, 44], sizes = [2, 8, 4], strides = [1, 1, 1]} : vector<2x8x84xf32> to vector<2x8x4xf32>
    "tpu.trace_start"() <{level = 10 : i32, message = "bqd,bkd->bqk"}> : () -> ()
    %cst_27 = arith.constant dense<0.000000e+00> : vector<2x8x8xf32>
    %69 = tpu.matmul %66, %67, %cst_27 {dimension_numbers = #tpu.dot_dimension_numbers<[2], [2], [1], [1], [0, 0, 0, 1, 1, 1], [0], [0]>} : vector<2x8x4xf32>, vector<2x8x4xf32>, vector<2x8x8xf32> -> vector<2x8x8xf32>
    "tpu.trace_stop"() : () -> ()
    %cst_28 = arith.constant 5.000000e-01 : f32
    %70 = vector.broadcast %cst_28 : f32 to vector<2x8x8xf32>
    %71 = arith.mulf %69, %70 : vector<2x8x8xf32>
    %cst_29 = arith.constant dense<0xFF800000> : vector<2x8xf32>
    %72 = vector.multi_reduction <maximumf>, %71, %cst_29 [2] : vector<2x8x8xf32> to vector<2x8xf32>
    %73 = vector.shape_cast %72 : vector<2x8xf32> to vector<2x8x1xf32>
    %74 = vector.broadcast %73 : vector<2x8x1xf32> to vector<2x8x8xf32>
    %75 = arith.subf %71, %74 : vector<2x8x8xf32>
    %76 = math.exp %75 : vector<2x8x8xf32>
    %cst_30 = arith.constant dense<0.000000e+00> : vector<2x8xf32>
    %77 = vector.multi_reduction <add>, %76, %cst_30 [2] : vector<2x8x8xf32> to vector<2x8xf32>
    %78 = vector.shape_cast %77 : vector<2x8xf32> to vector<2x8x1xf32>
    %79 = vector.broadcast %78 : vector<2x8x1xf32> to vector<2x8x8xf32>
    %80 = arith.divf %76, %79 : vector<2x8x8xf32>
    "tpu.trace_start"() <{level = 10 : i32, message = "bqk,bkd->bqd"}> : () -> ()
    %cst_31 = arith.constant dense<0.000000e+00> : vector<2x8x4xf32>
    %81 = tpu.matmul %80, %68, %cst_31 {dimension_numbers = #tpu.dot_dimension_numbers<[2], [1], [1], [2], [0, 0, 0, 1, 1, 2], [0], [0]>} : vector<2x8x8xf32>, vector<2x8x4xf32>, vector<2x8x4xf32> -> vector<2x8x4xf32>
    "tpu.trace_stop"() : () -> ()
    %82 = vector.shape_cast %81 : vector<2x8x4xf32> to vector<16x4xf32>
    %c12 = arith.constant 12 : index
    %c0_32 = arith.constant 0 : index
    %83 = vector.load %arg3[%c12, %c0_32] : memref<28x128xf32, #tpu.memory_space<vmem>>, vector<4x128xf32>
    %cst_33 = arith.constant dense<0.000000e+00> : vector<16x128xf32>
    %84 = tpu.matmul %82, %83, %cst_33 {dimension_numbers = #tpu.dot_dimension_numbers<[1], [0], [0], [1], [0, 0, 1, 1], [], []>} : vector<16x4xf32>, vector<4x128xf32>, vector<16x128xf32> -> vector<16x128xf32>
    %85 = arith.addf %65, %84 : vector<16x128xf32>
    %86 = vector.extract_strided_slice %4 {offsets = [0, 0, 48], sizes = [2, 8, 4], strides = [1, 1, 1]} : vector<2x8x84xf32> to vector<2x8x4xf32>
    %87 = vector.extract_strided_slice %4 {offsets = [0, 0, 52], sizes = [2, 8, 4], strides = [1, 1, 1]} : vector<2x8x84xf32> to vector<2x8x4xf32>
    %88 = vector.extract_strided_slice %4 {offsets = [0, 0, 56], sizes = [2, 8, 4], strides = [1, 1, 1]} : vector<2x8x84xf32> to vector<2x8x4xf32>
    "tpu.trace_start"() <{level = 10 : i32, message = "bqd,bkd->bqk"}> : () -> ()
    %cst_34 = arith.constant dense<0.000000e+00> : vector<2x8x8xf32>
    %89 = tpu.matmul %86, %87, %cst_34 {dimension_numbers = #tpu.dot_dimension_numbers<[2], [2], [1], [1], [0, 0, 0, 1, 1, 1], [0], [0]>} : vector<2x8x4xf32>, vector<2x8x4xf32>, vector<2x8x8xf32> -> vector<2x8x8xf32>
    "tpu.trace_stop"() : () -> ()
    %cst_35 = arith.constant 5.000000e-01 : f32
    %90 = vector.broadcast %cst_35 : f32 to vector<2x8x8xf32>
    %91 = arith.mulf %89, %90 : vector<2x8x8xf32>
    %cst_36 = arith.constant dense<0xFF800000> : vector<2x8xf32>
    %92 = vector.multi_reduction <maximumf>, %91, %cst_36 [2] : vector<2x8x8xf32> to vector<2x8xf32>
    %93 = vector.shape_cast %92 : vector<2x8xf32> to vector<2x8x1xf32>
    %94 = vector.broadcast %93 : vector<2x8x1xf32> to vector<2x8x8xf32>
    %95 = arith.subf %91, %94 : vector<2x8x8xf32>
    %96 = math.exp %95 : vector<2x8x8xf32>
    %cst_37 = arith.constant dense<0.000000e+00> : vector<2x8xf32>
    %97 = vector.multi_reduction <add>, %96, %cst_37 [2] : vector<2x8x8xf32> to vector<2x8xf32>
    %98 = vector.shape_cast %97 : vector<2x8xf32> to vector<2x8x1xf32>
    %99 = vector.broadcast %98 : vector<2x8x1xf32> to vector<2x8x8xf32>
    %100 = arith.divf %96, %99 : vector<2x8x8xf32>
    "tpu.trace_start"() <{level = 10 : i32, message = "bqk,bkd->bqd"}> : () -> ()
    %cst_38 = arith.constant dense<0.000000e+00> : vector<2x8x4xf32>
    %101 = tpu.matmul %100, %88, %cst_38 {dimension_numbers = #tpu.dot_dimension_numbers<[2], [1], [1], [2], [0, 0, 0, 1, 1, 2], [0], [0]>} : vector<2x8x8xf32>, vector<2x8x4xf32>, vector<2x8x4xf32> -> vector<2x8x4xf32>
    "tpu.trace_stop"() : () -> ()
    %102 = vector.shape_cast %101 : vector<2x8x4xf32> to vector<16x4xf32>
    %c16 = arith.constant 16 : index
    %c0_39 = arith.constant 0 : index
    %103 = vector.load %arg3[%c16, %c0_39] : memref<28x128xf32, #tpu.memory_space<vmem>>, vector<4x128xf32>
    %cst_40 = arith.constant dense<0.000000e+00> : vector<16x128xf32>
    %104 = tpu.matmul %102, %103, %cst_40 {dimension_numbers = #tpu.dot_dimension_numbers<[1], [0], [0], [1], [0, 0, 1, 1], [], []>} : vector<16x4xf32>, vector<4x128xf32>, vector<16x128xf32> -> vector<16x128xf32>
    %105 = arith.addf %85, %104 : vector<16x128xf32>
    %106 = vector.extract_strided_slice %4 {offsets = [0, 0, 60], sizes = [2, 8, 4], strides = [1, 1, 1]} : vector<2x8x84xf32> to vector<2x8x4xf32>
    %107 = vector.extract_strided_slice %4 {offsets = [0, 0, 64], sizes = [2, 8, 4], strides = [1, 1, 1]} : vector<2x8x84xf32> to vector<2x8x4xf32>
    %108 = vector.extract_strided_slice %4 {offsets = [0, 0, 68], sizes = [2, 8, 4], strides = [1, 1, 1]} : vector<2x8x84xf32> to vector<2x8x4xf32>
    "tpu.trace_start"() <{level = 10 : i32, message = "bqd,bkd->bqk"}> : () -> ()
    %cst_41 = arith.constant dense<0.000000e+00> : vector<2x8x8xf32>
    %109 = tpu.matmul %106, %107, %cst_41 {dimension_numbers = #tpu.dot_dimension_numbers<[2], [2], [1], [1], [0, 0, 0, 1, 1, 1], [0], [0]>} : vector<2x8x4xf32>, vector<2x8x4xf32>, vector<2x8x8xf32> -> vector<2x8x8xf32>
    "tpu.trace_stop"() : () -> ()
    %cst_42 = arith.constant 5.000000e-01 : f32
    %110 = vector.broadcast %cst_42 : f32 to vector<2x8x8xf32>
    %111 = arith.mulf %109, %110 : vector<2x8x8xf32>
    %cst_43 = arith.constant dense<0xFF800000> : vector<2x8xf32>
    %112 = vector.multi_reduction <maximumf>, %111, %cst_43 [2] : vector<2x8x8xf32> to vector<2x8xf32>
    %113 = vector.shape_cast %112 : vector<2x8xf32> to vector<2x8x1xf32>
    %114 = vector.broadcast %113 : vector<2x8x1xf32> to vector<2x8x8xf32>
    %115 = arith.subf %111, %114 : vector<2x8x8xf32>
    %116 = math.exp %115 : vector<2x8x8xf32>
    %cst_44 = arith.constant dense<0.000000e+00> : vector<2x8xf32>
    %117 = vector.multi_reduction <add>, %116, %cst_44 [2] : vector<2x8x8xf32> to vector<2x8xf32>
    %118 = vector.shape_cast %117 : vector<2x8xf32> to vector<2x8x1xf32>
    %119 = vector.broadcast %118 : vector<2x8x1xf32> to vector<2x8x8xf32>
    %120 = arith.divf %116, %119 : vector<2x8x8xf32>
    "tpu.trace_start"() <{level = 10 : i32, message = "bqk,bkd->bqd"}> : () -> ()
    %cst_45 = arith.constant dense<0.000000e+00> : vector<2x8x4xf32>
    %121 = tpu.matmul %120, %108, %cst_45 {dimension_numbers = #tpu.dot_dimension_numbers<[2], [1], [1], [2], [0, 0, 0, 1, 1, 2], [0], [0]>} : vector<2x8x8xf32>, vector<2x8x4xf32>, vector<2x8x4xf32> -> vector<2x8x4xf32>
    "tpu.trace_stop"() : () -> ()
    %122 = vector.shape_cast %121 : vector<2x8x4xf32> to vector<16x4xf32>
    %c20 = arith.constant 20 : index
    %c0_46 = arith.constant 0 : index
    %123 = vector.load %arg3[%c20, %c0_46] : memref<28x128xf32, #tpu.memory_space<vmem>>, vector<4x128xf32>
    %cst_47 = arith.constant dense<0.000000e+00> : vector<16x128xf32>
    %124 = tpu.matmul %122, %123, %cst_47 {dimension_numbers = #tpu.dot_dimension_numbers<[1], [0], [0], [1], [0, 0, 1, 1], [], []>} : vector<16x4xf32>, vector<4x128xf32>, vector<16x128xf32> -> vector<16x128xf32>
    %125 = arith.addf %105, %124 : vector<16x128xf32>
    %126 = vector.extract_strided_slice %4 {offsets = [0, 0, 72], sizes = [2, 8, 4], strides = [1, 1, 1]} : vector<2x8x84xf32> to vector<2x8x4xf32>
    %127 = vector.extract_strided_slice %4 {offsets = [0, 0, 76], sizes = [2, 8, 4], strides = [1, 1, 1]} : vector<2x8x84xf32> to vector<2x8x4xf32>
    %128 = vector.extract_strided_slice %4 {offsets = [0, 0, 80], sizes = [2, 8, 4], strides = [1, 1, 1]} : vector<2x8x84xf32> to vector<2x8x4xf32>
    "tpu.trace_start"() <{level = 10 : i32, message = "bqd,bkd->bqk"}> : () -> ()
    %cst_48 = arith.constant dense<0.000000e+00> : vector<2x8x8xf32>
    %129 = tpu.matmul %126, %127, %cst_48 {dimension_numbers = #tpu.dot_dimension_numbers<[2], [2], [1], [1], [0, 0, 0, 1, 1, 1], [0], [0]>} : vector<2x8x4xf32>, vector<2x8x4xf32>, vector<2x8x8xf32> -> vector<2x8x8xf32>
    "tpu.trace_stop"() : () -> ()
    %cst_49 = arith.constant 5.000000e-01 : f32
    %130 = vector.broadcast %cst_49 : f32 to vector<2x8x8xf32>
    %131 = arith.mulf %129, %130 : vector<2x8x8xf32>
    %cst_50 = arith.constant dense<0xFF800000> : vector<2x8xf32>
    %132 = vector.multi_reduction <maximumf>, %131, %cst_50 [2] : vector<2x8x8xf32> to vector<2x8xf32>
    %133 = vector.shape_cast %132 : vector<2x8xf32> to vector<2x8x1xf32>
    %134 = vector.broadcast %133 : vector<2x8x1xf32> to vector<2x8x8xf32>
    %135 = arith.subf %131, %134 : vector<2x8x8xf32>
    %136 = math.exp %135 : vector<2x8x8xf32>
    %cst_51 = arith.constant dense<0.000000e+00> : vector<2x8xf32>
    %137 = vector.multi_reduction <add>, %136, %cst_51 [2] : vector<2x8x8xf32> to vector<2x8xf32>
    %138 = vector.shape_cast %137 : vector<2x8xf32> to vector<2x8x1xf32>
    %139 = vector.broadcast %138 : vector<2x8x1xf32> to vector<2x8x8xf32>
    %140 = arith.divf %136, %139 : vector<2x8x8xf32>
    "tpu.trace_start"() <{level = 10 : i32, message = "bqk,bkd->bqd"}> : () -> ()
    %cst_52 = arith.constant dense<0.000000e+00> : vector<2x8x4xf32>
    %141 = tpu.matmul %140, %128, %cst_52 {dimension_numbers = #tpu.dot_dimension_numbers<[2], [1], [1], [2], [0, 0, 0, 1, 1, 2], [0], [0]>} : vector<2x8x8xf32>, vector<2x8x4xf32>, vector<2x8x4xf32> -> vector<2x8x4xf32>
    "tpu.trace_stop"() : () -> ()
    %142 = vector.shape_cast %141 : vector<2x8x4xf32> to vector<16x4xf32>
    %c24 = arith.constant 24 : index
    %c0_53 = arith.constant 0 : index
    %143 = vector.load %arg3[%c24, %c0_53] : memref<28x128xf32, #tpu.memory_space<vmem>>, vector<4x128xf32>
    %cst_54 = arith.constant dense<0.000000e+00> : vector<16x128xf32>
    %144 = tpu.matmul %142, %143, %cst_54 {dimension_numbers = #tpu.dot_dimension_numbers<[1], [0], [0], [1], [0, 0, 1, 1], [], []>} : vector<16x4xf32>, vector<4x128xf32>, vector<16x128xf32> -> vector<16x128xf32>
    %145 = arith.addf %125, %144 : vector<16x128xf32>
    %c0_55 = arith.constant 0 : index
    %c0_56 = arith.constant 0 : index
    %146 = vector.load %arg4[%c0_55, %c0_56] : memref<1x128xf32, #tpu.memory_space<vmem>>, vector<1x128xf32>
    %147 = vector.broadcast %146 : vector<1x128xf32> to vector<16x128xf32>
    %148 = arith.addf %145, %147 : vector<16x128xf32>
    %149 = vector.shape_cast %148 : vector<16x128xf32> to vector<2x8x128xf32>
    %c0_57 = arith.constant 0 : index
    %c0_58 = arith.constant 0 : index
    %c0_59 = arith.constant 0 : index
    %150 = vector.load %arg5[%c0_57, %c0_58, %c0_59] : memref<2x8x128xf32, #tpu.memory_space<vmem>>, vector<2x8x128xf32>
    tpu.vector_store %arg5[%c0_57, %c0_58, %c0_59], %149 {strides = array<i32>} : memref<2x8x128xf32, #tpu.memory_space<vmem>>, vector<2x8x128xf32>,
    return
  }
  func.func @transform_0(%arg0: i32) -> (i32, i32, i32) {
    %c0_i32 = arith.constant 0 : i32
    %c0_i32_0 = arith.constant 0 : i32
    %c0_i32_1 = arith.constant 0 : i32
    return %arg0, %c0_i32, %c0_i32_0 : i32, i32, i32
  }
  func.func @transform_1(%arg0: i32) -> (i32, i32) {
    %c0_i32 = arith.constant 0 : i32
    %c0_i32_0 = arith.constant 0 : i32
    %c0_i32_1 = arith.constant 0 : i32
    return %c0_i32, %c0_i32_0 : i32, i32
  }
  func.func @transform_2(%arg0: i32) -> (i32, i32) {
    %c0_i32 = arith.constant 0 : i32
    %c0_i32_0 = arith.constant 0 : i32
    %c0_i32_1 = arith.constant 0 : i32
    return %c0_i32, %c0_i32_0 : i32, i32
  }
  func.func @transform_3(%arg0: i32) -> (i32, i32) {
    %c0_i32 = arith.constant 0 : i32
    %c0_i32_0 = arith.constant 0 : i32
    %c0_i32_1 = arith.constant 0 : i32
    return %c0_i32, %c0_i32_0 : i32, i32
  }
  func.func @transform_4(%arg0: i32) -> (i32, i32, i32) {
    %c0_i32 = arith.constant 0 : i32
    %c0_i32_0 = arith.constant 0 : i32
    %c0_i32_1 = arith.constant 0 : i32
    return %arg0, %c0_i32, %c0_i32_0 : i32, i32, i32
  }
}

</mosaic_0001>

<bundles_post_ra>
// kernel: tpu_custom_call.1
= control target key start
LH: loop header
LB: loop body
LE: loop exit
PB: predicated region body
PF: predicated region fallthrough
CT: control target
= control target key end

     0   :  { %9 = vsyncpa [#allocation3], 0  ;;  %s2558_s0 = inlined_call_operand.hbm [shape: f32[4,8,28], index: 0, kind: input, shape index: {}]   ;;  %s2559_s1 = inlined_call_operand.hbm [shape: f32[28,84], index: 1, kind: input, shape index: {}]   ;;  %s2560_s2 = inlined_call_operand.hbm [shape: f32[28,128], index: 2, kind: input, shape index: {}]   ;;  %s2561_s3 = inlined_call_operand.vmem [shape: f32[1,128], index: 3, kind: input, shape index: {}]   ;;  %s2562_s4 = inlined_call_operand.hbm [shape: f32[4,8,128], index: 4, kind: output, shape index: {}]  }
   0x1   :  { %11 = vsyncpa [#allocation3 + $0x1], 0 }
   0x2   :  { %12 = vsyncpa [#allocation6], 0 }
   0x3   :  { %13 = vsyncpa [#allocation4], 0 }
   0x4   :  { %15 = vsyncpa [#allocation4 + $0x1], 0  ;;  %s2203_s15 = smov 0   ;;  %s2205_s16 = smov 0  }
   0x5   :  { %s2207_s17 = smov 0   ;;  %s2209_s18 = smov 0  }
   0x6 LB: > { %s2224_s19 = sadd.s32 4294967295, %s2150_s18   ;;  %s1756_s20 = sadd.s32 4294967294, %s2150_s18   ;;  %s2150_s18 = sphi %s2209_s18, %s2572_s18   ;;  %s2146_s17 = sphi %s2207_s17, %s2571_s17   ;;  %s2142_s16 = sphi %s2205_s16, %s2570_s16   ;;  %s2138_s15 = sphi %s2203_s15, %s2569_s15  }
   0x7   : > { %p41_p0 = scmp.ne.s32.totalorder %s2142_s16, %s2138_s15  ;;  %p42_p1 = scmp.eq.s32.totalorder %s2224_s19, 0 }
   0x8   : > { %p128_p2 = scmp.eq.s32.totalorder %s2224_s19, 1  ;;  %p134_p3 = scmp.eq.s32.totalorder %s1756_s20, 1 }
   0x9   : > { %p2233_p4 = por %p42_p1, %p41_p0  ;;  %p1757_p5 = scmp.ge.s32.totalorder %s2150_s18, 1 }
   0xa   : > { %p2238_p6 = por %p134_p3, %p41_p0  ;;  %p141_p7 = scmp.lt.s32.totalorder %s2150_s18, 3 }
   0xb   : > { %s152_s25 = sshll.u32 %s2559_s1, 4  ;;  %s2152_s27 = smov [#allocation5]   ;;  %s153_s25 = int_to_ptr.hbm [resolvable:$true] %s152_s25 }
   0xc   : > { %p2246_p8 = pnand %p1757_p5, %p141_p7  ;;  %s154_s28 = sshll.u32 %s2152_s27, 4  ;;  %s155_s28 = int_to_ptr.vmem [resolvable:$true] %s154_s28 }
   0xd   : > { %s166_s5 = sshll.u32 %s2560_s2, 4  ;;  %s2153_s6 = smov 128   ;;  %s167_s5 = int_to_ptr.hbm [resolvable:$true] %s166_s5 }
   0xe   : > { %p1854_p9 = pneg %p2246_p8  ;;  %s2154_s7 = smov 8  }
   0xf   : > { %s2155_s8 = smov [#allocation7]   ;;  %s2265_s10 = sadd.s32 1, %s2150_s18  }
  0x10   : > { %p1855_p10 = pnand %p1854_p9, %p42_p1  ;;  %s168_s9 = sshll.u32 %s2155_s8, 4  ;;  %s169_s9 = int_to_ptr.vmem [resolvable:$true] %s168_s9 }
  0x11   : > { %s28_s11 = sadd.s32 1, %s2146_s17  ;;  %s25_s12 = ssub.s32 %s2150_s18, %s2265_s10 }
  0x12   : > { %1857 = dma.hbm_to_vmem [thread:$0]  (!%p1855_p10), %s153_s25, 512, %s155_s28, [#allocation6], %s2153_s6, %s2153_s6, %s2154_s7  }
  0x13   : > { %1860 = dma.hbm_to_vmem [thread:$0]  (!%p1855_p10), %s167_s5, 512, %s169_s9, [#allocation6], %s2153_s6, %s2153_s6, %s2154_s7  }
  0x14   : > { %p35_p12 = scmp.ne.s32.totalorder %s2146_s17, %s2142_s16  ;;  %p26_p13 = scmp.eq.s32.totalorder %s25_s12, 0 }
  0x15   : > { %p36_p0 = scmp.eq.s32.totalorder %s2150_s18, 0  ;;  %p1871_p5 = scmp.lt.s32.totalorder %s2150_s18, 2 }
  0x16   : > { %p2275_p3 = por %p128_p2, %p35_p12  ;;  %s185_s20 = sand.u32 1, %s2146_s17  }
  0x17   : > { %s2281_s14 = scalar_select %p26_p13, %s2146_s17, %s28_s11  }
  0x18   : > { %p37_p7 = por %p36_p0, %p35_p12  ;;  %s1761_s23 = sshll.u32 %s185_s20, 4 }
  0x19   : > { %s1840_s24 = sshll.u32 %s2150_s18, 4  ;;  %s189_s29 = scalar_lea.vmem [#allocation2], %s1761_s23 }
  0x1a   : > { %s194_s28 = scalar_lea.hbm %s2558_s0, %s1840_s24  ;;  %s197_s30 = sshll.u32 %s189_s29, 4  ;;  %s198_s30 = int_to_ptr.vmem [resolvable:$true] %s197_s30 }
  0x1b   : > { %s195_s5 = sshll.u32 %s194_s28, 4  ;;  %p2288_p2 = pnand %p1871_p5, %p37_p7  ;;  %s196_s5 = int_to_ptr.hbm [resolvable:$true] %s195_s5 }
  0x1c   : > { %s186_s9 = scalar_lea.sflag [#allocation3], %s185_s20  ;;  %s2050_s11 = sshra.s32 %s196_s5, 4  ;;  %s2051_s11 = int_to_ptr.hbm [resolvable:$true] %s2050_s11 }
  0x1d   : > { %s2052_s12 = scalar_lea.hbm %s2051_s11, 16  ;;  %p2054_p10 = pneg %p2288_p2 }
  0x1e   : > { %p2053_p9 = scmp.ne.s32.totalorder %s2051_s11, %s2052_s12  ;;  %s2057_s25 = scalar_lea.hbm %s2558_s0, 32 }
  0x1f   : > { %p2058_p0 = scmp.lt.s32.totalorder %s2051_s11, %s2558_s0  ;;  %p2059_p5 = scmp.lt.s32.totalorder %s2057_s25, %s2052_s12 }
  0x20   : > { %p2055_p12 = pnand %p2054_p10, %p2053_p9 }
  0x21   : > { %p2060_p7 = por %p2059_p5, %p2058_p0 }
  0x22   : > { %p2056_p13 = pneg %p2055_p12 }
  0x24   : > { %p2061_p11 = pnand %p2060_p7, %p2056_p13 }
  0x26   : > { %2064 = shalt.err (!%p2061_p11)
}
  0x27   : > { %1864 = dma.hbm_to_vmem [thread:$0]  (!%p2288_p2), %s196_s5, 256, %s198_s30, %s186_s9, %s2153_s6, %s2153_s6, %s2154_s7  }
  0x28   : > { %209 = sbr.rel (%p2246_p8) target bundleno = 2737 (0xab1), region = 36  ;;  %s2308_s20 = sand.u32 (!%p2246_p8), 1, %s2142_s16  }
  0x29   : > { %s1765_s29 = sshll.u32 (!%p2246_p8), %s2308_s20, 4  ;;  %s212_s11 = scalar_lea.sflag (!%p2246_p8), [#allocation3], %s2308_s20 }
  0x2a   : > { %s215_s12 = scalar_lea.vmem (!%p2246_p8), [#allocation2], %s1765_s29 }
  0x2d   : > { %2125 = dma.done.wait (%p2233_p4), %s212_s11, 256  }
  0x2e   : > { %2127 = vsyncadd (%p2233_p4), %s212_s11, 4294967040 }
  0x2f   : > { %2129 = dma.done.wait (%p42_p1), [#allocation6], 1024  }
  0x30   : > { %2131 = vsyncadd (%p42_p1), [#allocation6], 4294966272  ;;  %vm266_vm0 = vcmask 1043456   ;;  %v258_v0 = vld [vmem:[#allocation5 + $0x18] sm:$0xf]  ;;  %v257_v1 = vld [vmem:[#allocation5 + $0x10] sm:$0xff] }
  0x31   : > { %1769 = vmatpush.msk.msra.mxu0 %vm266_vm0, %v258_v0  ;;  %v256_v2 = vld [vmem:[#allocation5 + $0x8] sm:$0xff]  ;;  %v255_v3 = vld [vmem:[#allocation5] sm:$0xff]  ;;  %vm259_vm1 = vcmask 228352   ;;  %s2156_s21 = smov 112   ;;  %s2157_s26 = smov 124   ;;  %vm296_vm2 = vcmask 31744  }
  0x32   : > { %v253_v4 = vld [vmem:[%s215_s12] sm:$0xff]  ;;  %v254_v5 = vld [vmem:[%s215_s12 + $0x8] sm:$0xff]  ;;  %s2158_s6 = smov 116   ;;  %vm350_vm3 = vcmask 64512   ;;  %s2159_s7 = smov 120  }
  0x33   : > { %283 = vmatpush.msra.mxu0 %v257_v1  ;;  %s2160_s30 = smov 108   ;;  %s2161_s5 = smov 100  }
  0x34   : > { %s2162_s8 = smov 104   ;;  %s2163_s9 = smov 88  }
  0x35   : > { %284 = vmatpush.msra.mxu0 %v256_v2  ;;  %s2164_s24 = smov 92   ;;  %s2165_s23 = smov 96  }
  0x36   : > { %s2166_s25 = smov 80   ;;  %s2167_s27 = smov 84  }
  0x37   : > { %285 = vmatpush.msra.mxu0 %v255_v3  ;;  %s2168_s28 = smov 76   ;;  %s2169_s11 = smov 72  }
  0x38   : > { %1770 = vmatmul.msk.f32.vlgmr.msra.gmra.mxu0 %vm259_vm1, %v253_v4  ;;  %s2170_s12 = smov 68  }
  0x40   : > { %1771 = vmatmul.msk.f32.gmra.mxu0 %vm259_vm1, %v254_v5 }
  0xb5   : > { %v2323_v6 = vpop.f32.mrf.mxu0 }
  0xb6   : > { %454 = vrot.lane.b32.xlu1 %v2323_v6, %s2156_s21  ;;  %294 = vrot.lane.b32.xlu0 %v2323_v6, %s2157_s26 }
  0xbd   : > { %v2327_v7 = vpop.f32.mrf.mxu0 }
  0xbe   : > { %452 = vrot.lane.b32.xlu1 %v2323_v6, %s2158_s6  ;;  %482 = vrot.lane.b32.xlu2 %v2327_v7, %s2156_s21  ;;  %s2171_s21 = smov 64  }
  0xbf   : > { %322 = vrot.lane.b32.xlu0 %v2327_v7, %s2157_s26  ;;  %s2172_s26 = smov 52  }
  0xc6   : > { %480 = vrot.lane.b32.xlu2 %v2327_v7, %s2158_s6  ;;  %s2173_s6 = smov 56  }
 0x118   : > { %v483_v8 = vpop.permute.xlu2 %482 }
 0x119   : > { %1780 = vmatpush.xpose.msk.msra.mxu2 %vm296_vm2, %v483_v8  ;;  %v451_v8 = vld [vmem:[#allocation7] sm:$0xf] }
 0x120   : > { %v481_v9 = vpop.permute.xlu2 %480 }
 0x121   : > { %1781 = vmatmul.msk.f32.vlgmr.msra.gmra.mxu2 %vm296_vm2, %v481_v9 }
 0x128   : > { %v455_v10 = vpop.permute.xlu1 %454  ;;  %v295_v11 = vpop.permute.xlu0 %294 }
 0x129   : > { %1772 = vmatpush.xpose.msk.msra.mxu1 %vm296_vm2, %v295_v11 }
 0x12c   : > { %1773 = vmatmul.msk.f32.vlgmr.msra.gmra.mxu1 %vm296_vm2, %v2323_v6 }
 0x12d   : > { %1778 = vmatpush.xpose.msk.msrb.mxu1 %vm296_vm2, %v455_v10 }
 0x130   : > { %v453_v13 = vpop.permute.xlu1 %452 }
 0x131   : > { %v323_v12 = vpop.permute.xlu0 %322 }
 0x132   : > { %1774 = vmatpush.xpose.msk.msrb.mxu0 %vm296_vm2, %v323_v12 }
 0x134   : > { %1779 = vmatmul.msk.f32.vlgmr.msrb.gmra.mxu1 %vm296_vm2, %v453_v13 }
 0x135   : > { %1775 = vmatmul.msk.f32.vlgmr.msrb.gmra.mxu0 %vm296_vm2, %v2327_v7 }
 0x136   : > { %1787 = vmatpush.msk.msra.mxu0 %vm266_vm0, %v451_v8 }
 0x1a4   : > { %v505_v34 = vpop.f32.mrf.mxu2 }
 0x1a5   : > { %v509_v35 = vmul.f32 0.5, %v505_v34 }
 0x1a7   : > { %v513_v37 = vsel %vm350_vm3, %v509_v35, -inf }
 0x1a9   : > { %v318_v14 = vpop.f32.mrf.mxu1 }
 0x1aa   : > { %v348_v15 = vmul.f32 0.5, %v318_v14 }
 0x1ac   : > { %v351_v16 = vsel %vm350_vm3, %v348_v15, -inf }
 0x1ad   : > { %352 = vmax.xlane.f32.xlu0 %v351_v16 }
 0x1b1   : > { %v477_v31 = vpop.f32.mrf.mxu1 }
 0x1b2   : > { %v345_v17 = vpop.f32.mrf.mxu0  ;;  %v508_v32 = vmul.f32 0.5, %v477_v31 }
 0x1b3   : > { %v349_v18 = vmul.f32 0.5, %v345_v17 }
 0x1b4   : > { %v510_v33 = vsel %vm350_vm3, %v508_v32, -inf }
 0x1b5   : > { %v354_v19 = vsel %vm350_vm3, %v349_v18, -inf }
 0x1b6   : > { %355 = vmax.xlane.f32.xlu1 %v354_v19 }
 0x1c1   : > { %399 = vrot.lane.b32.xlu0 %v2323_v6, %s2159_s7 }
 0x1cf   : > { %425 = vrot.lane.b32.xlu1 %v2327_v7, %s2159_s7  ;;  %s2174_s7 = smov 60  }
 0x220   : > { %v353_v20 = vpop.xlane.xlu0 %352 }
 0x221   : > { %v357_v21 = vsub.f32 %v348_v15, %v353_v20 }
 0x223   : > { %v359_v22 = vmul.f32 1.442695, %v357_v21 }
 0x225   : > { %1934 = vpow2.f32 %v359_v22 }
 0x229   : > { %v356_v23 = vpop.xlane.xlu1 %355 }
 0x22a   : > { %v358_v24 = vsub.f32 %v349_v18, %v356_v23 }
 0x22b   : > { %v1935_v25 = vpop.eup %1934 }
 0x22c   : > { %v361_v26 = vmul.f32 1.442695, %v358_v24  ;;  %v363_v27 = vsel %vm350_vm3, %v1935_v25, 0.0 }
 0x22d   : > { %364 = vadd.xlane.f32.xlu2 %v363_v27 }
 0x22e   : > { %1936 = vpow2.f32 %v361_v26 }
 0x233   : > { %v400_v28 = vpop.permute.xlu0 %399 }
 0x234   : > { %v2348_v29 = vpop.eup %1936  ;;  %420 = vmatpush.msra.mxu3 %v400_v28 }
 0x235   : > { %v366_v30 = vsel %vm350_vm3, %v2348_v29, 0.0 }
 0x236   : > { %367 = vadd.xlane.f32.xlu2 %v366_v30 }
 0x23e   : > { %511 = vmax.xlane.f32.xlu2 %v510_v33 }
 0x241   : > { %v426_v36 = vpop.permute.xlu1 %425 }
 0x242   : > { %446 = vmatpush.msrb.mxu3 %v426_v36 }
 0x246   : > { %514 = vmax.xlane.f32.xlu2 %v513_v37 }
 0x25e   : > { %558 = vrot.lane.b32.xlu2 %v2323_v6, %s2160_s30 }
 0x266   : > { %677 = vrot.lane.b32.xlu2 %v2323_v6, %s2161_s5 }
 0x26e   : > { %675 = vrot.lane.b32.xlu2 %v2323_v6, %s2162_s8 }
 0x276   : > { %705 = vrot.lane.b32.xlu2 %v2327_v7, %s2161_s5 }
 0x27e   : > { %870 = vrot.lane.b32.xlu2 %v2323_v6, %s2163_s9 }
 0x286   : > { %868 = vrot.lane.b32.xlu2 %v2323_v6, %s2164_s24 }
 0x2a0   : > { %v365_v38 = vpop.xlane.xlu2 %364 }
 0x2a1   : > { %1938 = vrcp.f32 %v365_v38  ;;  %v380_v43 = vand.u32 2147483648, %v365_v38  ;;  %v378_v45 = vand.u32 2147483647, %v365_v38  ;;  %vm374_vm5 = vweird.f32 %v365_v38 }
 0x2a3   : > { %v381_v47 = vor.u32 1.1754944e-38, %v380_v43  ;;  %vm379_vm7 = vcmp.eq.f32.partialorder %v378_v45, 8.507059e+37 }
 0x2a7   : > { %v1939_v39 = vpop.eup %1938 }
 0x2a8   : > { %v370_v40 = vmul.f32 %v1939_v39, %v365_v38  ;;  %vm375_vm4 = vweird.f32 %v1939_v39 }
 0x2a9   : > { %v368_v41 = vpop.xlane.xlu2 %367  ;;  %vm376_vm6 = vmor %vm374_vm5, %vm375_vm4 }
 0x2aa   : > { %v371_v42 = vsub.f32 1.0, %v370_v40  ;;  %1940 = vrcp.f32 %v368_v41  ;;  %v395_v56 = vand.u32 2147483648, %v368_v41  ;;  %v393_v59 = vand.u32 2147483647, %v368_v41 }
 0x2ab   : > { %vm389_vm9 = vweird.f32 %v368_v41 }
 0x2ac   : > { %v372_v44 = vmul.f32 %v1939_v39, %v371_v42  ;;  %v396_v61 = vor.u32 1.1754944e-38, %v395_v56  ;;  %vm394_vm11 = vcmp.eq.f32.partialorder %v393_v59, 8.507059e+37 }
 0x2ae   : > { %v373_v46 = vadd.f32 %v1939_v39, %v372_v44 }
 0x2b0   : > { %v1941_v48 = vpop.eup %1940  ;;  %v377_v49 = vsel %vm376_vm6, %v1939_v39, %v373_v46  ;;  %v610_v46 = vld [vmem:[#allocation7 + $0x4] sm:$0xf] }
 0x2b1   : > { %v385_v50 = vmul.f32 %v1941_v48, %v368_v41  ;;  %v512_v51 = vpop.xlane.xlu2 %511  ;;  %v382_v52 = vsel %vm379_vm7, %v381_v47, %v377_v49  ;;  %vm390_vm8 = vweird.f32 %v1941_v48  ;;  %1784 = vmatpush.msk.msrb.mxu2 %vm266_vm0, %v610_v46 }
 0x2b2   : > { %v516_v53 = vsub.f32 %v508_v32, %v512_v51  ;;  %v383_v54 = vmul.f32 %v1935_v25, %v382_v52  ;;  %vm391_vm10 = vmor %vm389_vm9, %vm390_vm8 }
 0x2b3   : > { %v386_v55 = vsub.f32 1.0, %v385_v50 }
 0x2b4   : > { %v518_v57 = vmul.f32 1.442695, %v516_v53  ;;  %1776 = vmatmul.msk.f32.vlgmr.msra.gmra.mxu3 %vm350_vm3, %v383_v54 }
 0x2b5   : > { %v387_v58 = vmul.f32 %v1941_v48, %v386_v55 }
 0x2b6   : > { %1942 = vpow2.f32 %v518_v57 }
 0x2b7   : > { %v388_v60 = vadd.f32 %v1941_v48, %v387_v58 }
 0x2b9   : > { %v515_v62 = vpop.xlane.xlu2 %514  ;;  %v392_v63 = vsel %vm391_vm10, %v1941_v48, %v388_v60 }
 0x2ba   : > { %v517_v0 = vsub.f32 %v509_v35, %v515_v62  ;;  %v397_v1 = vsel %vm394_vm11, %v396_v61, %v392_v63 }
 0x2bb   : > { %v398_v2 = vmul.f32 %v2348_v29, %v397_v1 }
 0x2bc   : > { %v1943_v3 = vpop.eup %1942  ;;  %v520_v4 = vmul.f32 1.442695, %v517_v0 }
 0x2bd   : > { %1777 = vmatmul.msk.f32.vlgmr.msrb.gmra.mxu3 %vm350_vm3, %v398_v2  ;;  %v522_v5 = vsel %vm350_vm3, %v1943_v3, 0.0 }
 0x2be   : > { %1944 = vpow2.f32 %v520_v4  ;;  %523 = vadd.xlane.f32.xlu0 %v522_v5 }
 0x2c1   : > { %v559_v9 = vpop.permute.xlu2 %558 }
 0x2c2   : > { %579 = vmatpush.msra.mxu3 %v559_v9 }
 0x2c4   : > { %v1945_v10 = vpop.eup %1944 }
 0x2c5   : > { %v525_v11 = vsel %vm350_vm3, %v1945_v10, 0.0 }
 0x2c6   : > { %526 = vadd.xlane.f32.xlu1 %v525_v11 }
 0x2c9   : > { %v678_v12 = vpop.permute.xlu2 %677 }
 0x2ca   : > { %1790 = vmatpush.xpose.msk.msrb.mxu3 %vm296_vm2, %v678_v12 }
 0x2d1   : > { %v676_v13 = vpop.permute.xlu2 %675 }
 0x2d2   : > { %584 = vrot.lane.b32.xlu0 %v2327_v7, %s2160_s30  ;;  %s2175_s30 = smov 48  }
 0x2d9   : > { %v706_v14 = vpop.permute.xlu2 %705 }
 0x2da   : > { %781 = vrot.lane.b32.xlu0 %v2323_v6, %s2165_s23 }
 0x2df   : > { %703 = vrot.lane.b32.xlu1 %v2327_v7, %s2162_s8 }
 0x2e1   : > { %v871_v15 = vpop.permute.xlu2 %870 }
 0x2e2   : > { %1799 = vmatpush.xpose.msk.msrb.mxu0 %vm296_vm2, %v871_v15  ;;  %v833_v15 = vld [vmem:[#allocation7 + $0x8] sm:$0xf] }
 0x2e3   : > { %1796 = vmatpush.msk.msra.mxu2 %vm266_vm0, %v833_v15 }
 0x2e9   : > { %v869_v39 = vpop.permute.xlu2 %868 }
 0x331   : > { %v524_v16 = vpop.xlane.xlu0 %523 }
 0x332   : > { %1946 = vrcp.f32 %v524_v16  ;;  %v539_v22 = vand.u32 2147483648, %v524_v16  ;;  %v537_v24 = vand.u32 2147483647, %v524_v16  ;;  %vm533_vm13 = vweird.f32 %v524_v16 }
 0x334   : > { %v540_v27 = vor.u32 1.1754944e-38, %v539_v22  ;;  %vm538_vm15 = vcmp.eq.f32.partialorder %v537_v24, 8.507059e+37 }
 0x337   : > { %v422_v17 = vpop.f32.mrf.mxu3 }
 0x338   : > { %v1947_v18 = vpop.eup %1946  ;;  %1788 = vmatmul.msk.f32.vlgmr.msra.gmra.mxu0 %vm296_vm2, %v422_v17 }
 0x339   : > { %v529_v19 = vmul.f32 %v1947_v18, %v524_v16  ;;  %v527_v20 = vpop.xlane.xlu1 %526  ;;  %vm534_vm12 = vweird.f32 %v1947_v18 }
 0x33a   : > { %1948 = vrcp.f32 %v527_v20  ;;  %vm535_vm14 = vmor %vm533_vm13, %vm534_vm12  ;;  %v554_v34 = vand.u32 2147483648, %v527_v20  ;;  %v552_v37 = vand.u32 2147483647, %v527_v20  ;;  %vm548_vm4 = vweird.f32 %v527_v20 }
 0x33b   : > { %v530_v21 = vsub.f32 1.0, %v529_v19 }
 0x33c   : > { %v555_v40 = vor.u32 1.1754944e-38, %v554_v34  ;;  %vm553_vm6 = vcmp.eq.f32.partialorder %v552_v37, 8.507059e+37 }
 0x33d   : > { %v531_v23 = vmul.f32 %v1947_v18, %v530_v21 }
 0x33f   : > { %v532_v25 = vadd.f32 %v1947_v18, %v531_v23 }
 0x340   : > { %v1949_v26 = vpop.eup %1948  ;;  %v448_v28 = vpop.f32.mrf.mxu3 }
 0x341   : > { %v536_v29 = vsel %vm535_vm14, %v1947_v18, %v532_v25  ;;  %v544_v30 = vmul.f32 %v1949_v26, %v527_v20  ;;  %1789 = vmatmul.msk.f32.gmra.mxu0 %vm296_vm2, %v448_v28  ;;  %vm549_vm1 = vweird.f32 %v1949_v26 }
 0x342   : > { %v541_v31 = vsel %vm538_vm15, %v540_v27, %v536_v29  ;;  %vm550_vm5 = vmor %vm548_vm4, %vm549_vm1 }
 0x343   : > { %v545_v32 = vsub.f32 1.0, %v544_v30  ;;  %v542_v33 = vmul.f32 %v1943_v3, %v541_v31 }
 0x344   : > { %v585_v35 = vpop.permute.xlu0 %584 }
 0x345   : > { %v546_v36 = vmul.f32 %v1949_v26, %v545_v32  ;;  %1782 = vmatmul.msk.f32.vlgmr.msra.gmra.mxu3 %vm350_vm3, %v542_v33  ;;  %605 = vmatpush.msra.mxu1 %v585_v35 }
 0x347   : > { %1792 = vmatpush.xpose.msk.msrb.mxu1 %vm296_vm2, %v706_v14  ;;  %v547_v38 = vadd.f32 %v1949_v26, %v546_v36 }
 0x349   : > { %v551_v41 = vsel %vm550_vm5, %v1949_v26, %v547_v38  ;;  %1800 = vmatmul.msk.f32.vlgmr.msrb.gmra.mxu0 %vm296_vm2, %v869_v39 }
 0x34a   : > { %v556_v42 = vsel %vm553_vm6, %v555_v40, %v551_v41 }
 0x34b   : > { %v557_v43 = vmul.f32 %v1945_v10, %v556_v42 }
 0x34c   : > { %v782_v44 = vpop.permute.xlu0 %781 }
 0x34d   : > { %1783 = vmatmul.msk.f32.vlgmr.msra.gmra.mxu1 %vm350_vm3, %v557_v43  ;;  %1791 = vmatmul.msk.f32.vlgmr.msrb.gmra.mxu3 %vm296_vm2, %v676_v13 }
 0x34e   : > { %802 = vmatpush.msra.mxu3 %v782_v44 }
 0x351   : > { %v704_v45 = vpop.permute.xlu1 %703 }
 0x355   : > { %1793 = vmatmul.msk.f32.vlgmr.msrb.gmra.mxu1 %vm296_vm2, %v704_v45 }
 0x3b5   : > { %v2387_v47 = vpop.f32.mrf.mxu0 }
 0x3be   : > { %v2389_v48 = vpop.f32.mrf.mxu0 }
 0x3c6   : > { %v893_v49 = vpop.f32.mrf.mxu0 }
 0x3c7   : > { %v924_v50 = vmul.f32 0.5, %v893_v49 }
 0x3c8   : > { %v581_v51 = vpop.f32.mrf.mxu3 }
 0x3c9   : > { %1785 = vmatmul.msk.f32.vlgmr.msrb.gmra.mxu2 %vm296_vm2, %v581_v51  ;;  %v926_v52 = vsel %vm350_vm3, %v924_v50, -inf }
 0x3ca   : > { %927 = vmax.xlane.f32.xlu1 %v926_v52  ;;  %v607_v53 = vpop.f32.mrf.mxu1 }
 0x3d0   : > { %v700_v54 = vpop.f32.mrf.mxu3 }
 0x3d1   : > { %v731_v55 = vmul.f32 0.5, %v700_v54  ;;  %1786 = vmatmul.msk.f32.gmra.mxu2 %vm296_vm2, %v607_v53 }
 0x3d2   : > { %v728_v56 = vpop.f32.mrf.mxu1 }
 0x3d3   : > { %v732_v57 = vmul.f32 0.5, %v728_v56  ;;  %v733_v58 = vsel %vm350_vm3, %v731_v55, -inf }
 0x3d4   : > { %734 = vmax.xlane.f32.xlu0 %v733_v58 }
 0x3d5   : > { %v736_v59 = vsel %vm350_vm3, %v732_v57, -inf }
 0x3d6   : > { %737 = vmax.xlane.f32.xlu2 %v736_v59  ;;  %v1026_v59 = vld [vmem:[#allocation7 + $0xc] sm:$0xf] }
 0x3e3   : > { %898 = vrot.lane.b32.xlu1 %v2327_v7, %s2163_s9  ;;  %s1841_s9 = sshll.u32 %s2224_s19, 4  ;;  %s1649_s19 = scalar_lea.sflag [#allocation4], %s2308_s20 }
 0x3e8   : > { %896 = vrot.lane.b32.xlu0 %v2327_v7, %s2164_s24 }
 0x3ee   : > { %807 = vrot.lane.b32.xlu2 %v2327_v7, %s2165_s23 }
 0x43d   : > { %v928_v60 = vpop.xlane.xlu1 %927 }
 0x43e   : > { %v932_v61 = vsub.f32 %v924_v50, %v928_v60 }
 0x440   : > { %v934_v62 = vmul.f32 1.442695, %v932_v61 }
 0x442   : > { %1950 = vpow2.f32 %v934_v62 }
 0x447   : > { %v735_v63 = vpop.xlane.xlu0 %734 }
 0x448   : > { %v2402_v0 = vpop.eup %1950  ;;  %v739_v1 = vsub.f32 %v731_v55, %v735_v63 }
 0x449   : > { %v738_v2 = vpop.xlane.xlu2 %737  ;;  %v938_v3 = vsel %vm350_vm3, %v2402_v0, 0.0 }
 0x44a   : > { %v741_v4 = vmul.f32 1.442695, %v739_v1  ;;  %v740_v5 = vsub.f32 %v732_v57, %v738_v2  ;;  %939 = vadd.xlane.f32.xlu1 %v938_v3 }
 0x44c   : > { %1952 = vpow2.f32 %v741_v4  ;;  %v743_v8 = vmul.f32 1.442695, %v740_v5 }
 0x44e   : > { %1954 = vpow2.f32 %v743_v8  ;;  %v637_v8 = vpop.f32.mrf.mxu2 }
 0x451   : > { %v808_v9 = vpop.permute.xlu2 %807 }
 0x452   : > { %v1953_v10 = vpop.eup %1952  ;;  %828 = vmatpush.msra.mxu1 %v808_v9 }
 0x453   : > { %v745_v11 = vsel %vm350_vm3, %v1953_v10, 0.0 }
 0x454   : > { %v2407_v12 = vpop.eup %1954  ;;  %746 = vadd.xlane.f32.xlu0 %v745_v11 }
 0x455   : > { %v899_v13 = vpop.permute.xlu1 %898  ;;  %v748_v14 = vsel %vm350_vm3, %v2407_v12, 0.0 }
 0x456   : > { %749 = vadd.xlane.f32.xlu2 %v748_v14  ;;  %1801 = vmatpush.xpose.msk.msrb.mxu3 %vm296_vm2, %v899_v13  ;;  %v2438_v9 = vpop.f32.mrf.mxu2  ;;  %v670_v13 = vadd.f32 %v2387_v47, %v637_v8 }
 0x45a   : > { %v897_v16 = vpop.permute.xlu0 %896 }
 0x463   : > { %1061 = vrot.lane.b32.xlu1 %v2323_v6, %s2166_s25 }
 0x468   : > { %974 = vrot.lane.b32.xlu0 %v2323_v6, %s2167_s27 }
 0x46e   : > { %1063 = vrot.lane.b32.xlu2 %v2323_v6, %s2168_s28 }
 0x470   : > { %1091 = vrot.lane.b32.xlu0 %v2327_v7, %s2168_s28 }
 0x476   : > { %1089 = vrot.lane.b32.xlu2 %v2327_v7, %s2166_s25  ;;  %s1660_s25 = scalar_lea.hbm %s2562_s4, %s1841_s9 }
 0x4bd   : > { %v940_v17 = vpop.xlane.xlu1 %939 }
 0x4be   : > { %1956 = vrcp.f32 %v940_v17  ;;  %v955_v45 = vand.u32 2147483648, %v940_v17  ;;  %vm949_vm1 = vweird.f32 %v940_v17  ;;  %v953_v50 = vand.u32 2147483647, %v940_v17 }
 0x4c0   : > { %v956_v54 = vor.u32 1.1754944e-38, %v955_v45  ;;  %vm954_vm5 = vcmp.eq.f32.partialorder %v953_v50, 8.507059e+37 }
 0x4c4   : > { %v1957_v19 = vpop.eup %1956 }
 0x4c5   : > { %v945_v21 = vmul.f32 %v1957_v19, %v940_v17  ;;  %vm950_vm13 = vweird.f32 %v1957_v19 }
 0x4c6   : > { %vm951_vm4 = vmor %vm949_vm1, %vm950_vm13 }
 0x4c7   : > { %v747_v18 = vpop.xlane.xlu0 %746  ;;  %v946_v25 = vsub.f32 1.0, %v945_v21 }
 0x4c8   : > { %1958 = vrcp.f32 %v747_v18  ;;  %v762_v28 = vand.u32 2147483648, %v747_v18  ;;  %v760_v30 = vand.u32 2147483647, %v747_v18  ;;  %vm756_vm8 = vweird.f32 %v747_v18 }
 0x4c9   : > { %v750_v20 = vpop.xlane.xlu2 %749  ;;  %v947_v32 = vmul.f32 %v1957_v19, %v946_v25 }
 0x4ca   : > { %1960 = vrcp.f32 %v750_v20  ;;  %v777_v33 = vand.u32 2147483648, %v750_v20  ;;  %v775_v36 = vand.u32 2147483647, %v750_v20  ;;  %v763_v37 = vor.u32 1.1754944e-38, %v762_v28 }
 0x4cb   : > { %vm761_vm11 = vcmp.eq.f32.partialorder %v760_v30, 8.507059e+37  ;;  %vm771_vm12 = vweird.f32 %v750_v20  ;;  %v948_v42 = vadd.f32 %v1957_v19, %v947_v32 }
 0x4cc   : > { %v778_v41 = vor.u32 1.1754944e-38, %v777_v33  ;;  %vm776_vm15 = vcmp.eq.f32.partialorder %v775_v36, 8.507059e+37 }
 0x4cd   : > { %v952_v52 = vsel %vm951_vm4, %v1957_v19, %v948_v42 }
 0x4ce   : > { %v1959_v22 = vpop.eup %1958  ;;  %v957_v55 = vsel %vm954_vm5, %v956_v54, %v952_v52 }
 0x4cf   : > { %v752_v23 = vmul.f32 %v1959_v22, %v747_v18  ;;  %vm757_vm7 = vweird.f32 %v1959_v22  ;;  %v958_v57 = vmul.f32 %v2402_v0, %v957_v55 }
 0x4d0   : > { %v1961_v24 = vpop.eup %1960  ;;  %vm758_vm10 = vmor %vm756_vm8, %vm757_vm7 }
 0x4d1   : > { %v753_v26 = vsub.f32 1.0, %v752_v23  ;;  %v767_v27 = vmul.f32 %v1961_v24, %v750_v20  ;;  %vm772_vm9 = vweird.f32 %v1961_v24  ;;  %v1064_v53 = vpop.permute.xlu2 %1063 }
 0x4d2   : > { %vm773_vm14 = vmor %vm771_vm12, %vm772_vm9 }
 0x4d3   : > { %v754_v29 = vmul.f32 %v1959_v22, %v753_v26  ;;  %v768_v31 = vsub.f32 1.0, %v767_v27 }
 0x4d5   : > { %v755_v34 = vadd.f32 %v1959_v22, %v754_v29  ;;  %v769_v35 = vmul.f32 %v1961_v24, %v768_v31  ;;  %v1062_v58 = vpop.permute.xlu1 %1061 }
 0x4d7   : > { %v759_v38 = vsel %vm758_vm10, %v1959_v22, %v755_v34  ;;  %v770_v39 = vadd.f32 %v1961_v24, %v769_v35 }
 0x4d8   : > { %v764_v40 = vsel %vm761_vm11, %v763_v37, %v759_v38 }
 0x4d9   : > { %v774_v43 = vsel %vm773_vm14, %v1961_v24, %v770_v39  ;;  %v765_v44 = vmul.f32 %v1953_v10, %v764_v40  ;;  %v1090_v5 = vpop.permute.xlu2 %1089 }
 0x4da   : > { %v779_v46 = vsel %vm776_vm15, %v778_v41, %v774_v43  ;;  %v975_v49 = vpop.permute.xlu0 %974 }
 0x4db   : > { %1794 = vmatmul.msk.f32.vlgmr.msra.gmra.mxu3 %vm350_vm3, %v765_v44  ;;  %995 = vmatpush.msrb.mxu1 %v975_v49  ;;  %v780_v51 = vmul.f32 %v2407_v12, %v779_v46 }
 0x4dc   : > { %1805 = vmatpush.msk.msra.mxu3 %vm266_vm0, %v1026_v59 }
 0x4dd   : > { %1795 = vmatmul.msk.f32.vlgmr.msra.gmra.mxu1 %vm350_vm3, %v780_v51 }
 0x4de   : > { %1808 = vmatpush.xpose.msk.msra.mxu1 %vm296_vm2, %v1064_v53 }
 0x4e2   : > { %v1092_v56 = vpop.permute.xlu0 %1091 }
 0x4e3   : > { %1802 = vmatmul.msk.f32.vlgmr.msrb.gmra.mxu3 %vm296_vm2, %v897_v16  ;;  %1810 = vmatpush.xpose.msk.msrb.mxu2 %vm296_vm2, %v1092_v56 }
 0x4e5   : > { %1803 = vmatmul.msk.f32.vlgmr.msrb.gmra.mxu1 %vm350_vm3, %v958_v57  ;;  %v1219_v57 = vld [vmem:[#allocation7 + $0x10] sm:$0xf] }
 0x4ed   : > { %1809 = vmatmul.msk.f32.vlgmr.msra.gmra.mxu1 %vm296_vm2, %v1062_v58 }
 0x55a   : > { %v830_v60 = vpop.f32.mrf.mxu1 }
 0x55e   : > { %v804_v61 = vpop.f32.mrf.mxu3 }
 0x55f   : > { %1797 = vmatmul.msk.f32.vlgmr.msra.gmra.mxu2 %vm296_vm2, %v804_v61 }
 0x560   : > { %1814 = vmatpush.msk.msra.mxu2 %vm266_vm0, %v1219_v57  ;;  %v1412_v57 = vld [vmem:[#allocation7 + $0x14] sm:$0xf] }
 0x562   : > { %v997_v62 = vpop.f32.mrf.mxu1 }
 0x563   : > { %1806 = vmatmul.msk.f32.vlgmr.msra.gmra.mxu3 %vm296_vm2, %v997_v62 }
 0x566   : > { %v921_v63 = vpop.f32.mrf.mxu3 }
 0x567   : > { %v925_v1 = vmul.f32 0.5, %v921_v63  ;;  %1798 = vmatmul.msk.f32.gmra.mxu2 %vm296_vm2, %v830_v60 }
 0x569   : > { %v929_v0 = vsel %vm350_vm3, %v925_v1, -inf }
 0x56a   : > { %930 = vmax.xlane.f32.xlu1 %v929_v0  ;;  %v1086_v2 = vpop.f32.mrf.mxu1 }
 0x56b   : > { %v1117_v3 = vmul.f32 0.5, %v1086_v2 }
 0x56d   : > { %v1119_v4 = vsel %vm350_vm3, %v1117_v3, -inf }
 0x56e   : > { %1120 = vmax.xlane.f32.xlu0 %v1119_v4 }
 0x56f   : > { %1811 = vmatmul.msk.f32.vlgmr.msrb.gmra.mxu2 %vm296_vm2, %v1090_v5 }
 0x582   : > { %1167 = vrot.lane.b32.xlu0 %v2323_v6, %s2169_s11 }
 0x58a   : > { %1254 = vrot.lane.b32.xlu0 %v2323_v6, %s2170_s12 }
 0x5dd   : > { %v931_v10 = vpop.xlane.xlu1 %930 }
 0x5de   : > { %v933_v11 = vsub.f32 %v925_v1, %v931_v10 }
 0x5e0   : > { %v936_v12 = vmul.f32 1.442695, %v933_v11 }
 0x5e1   : > { %v1121_v14 = vpop.xlane.xlu0 %1120 }
 0x5e2   : > { %1962 = vpow2.f32 %v936_v12  ;;  %v1125_v15 = vsub.f32 %v1117_v3, %v1121_v14  ;;  %v860_v16 = vpop.f32.mrf.mxu2 }
 0x5e3   : > { %v2441_v17 = vadd.f32 %v860_v16, %v670_v13 }
 0x5e4   : > { %v1127_v18 = vmul.f32 1.442695, %v1125_v15 }
 0x5e6   : > { %1964 = vpow2.f32 %v1127_v18 }
 0x5e8   : > { %v1963_v19 = vpop.eup %1962 }
 0x5e9   : > { %v941_v20 = vsel %vm350_vm3, %v1963_v19, 0.0 }
 0x5ea   : > { %942 = vadd.xlane.f32.xlu2 %v941_v20  ;;  %v2450_v47 = vpop.f32.mrf.mxu2 }
 0x5ec   : > { %v1965_v21 = vpop.eup %1964 }
 0x5ed   : > { %v1131_v22 = vsel %vm350_vm3, %v1965_v21, 0.0 }
 0x5ee   : > { %1132 = vadd.xlane.f32.xlu1 %v1131_v22 }
 0x5f2   : > { %v1114_v23 = vpop.f32.mrf.mxu2 }
 0x5f3   : > { %v1118_v24 = vmul.f32 0.5, %v1114_v23 }
 0x5f4   : > { %v1168_v31 = vpop.permute.xlu0 %1167 }
 0x5f5   : > { %v1122_v25 = vsel %vm350_vm3, %v1118_v24, -inf }
 0x5fc   : > { %v1255_v55 = vpop.permute.xlu0 %1254 }
 0x602   : > { %1000 = vrot.lane.b32.xlu2 %v2327_v7, %s2167_s27  ;;  %s250_s27 = scalar_lea.vmem [#allocation8], %s1765_s29 }
 0x603   : > { %s1661_s28 = sshll.u32 %s250_s27, 4  ;;  %s1662_s28 = int_to_ptr.vmem [resolvable:$true] %s1661_s28 }
 0x607   : > { %1256 = vrot.lane.b32.xlu1 %v2323_v6, %s2171_s21 }
 0x60f   : > { %1193 = vrot.lane.b32.xlu1 %v2327_v7, %s2169_s11  ;;  %s1663_s11 = sshll.u32 %s1660_s25, 4  ;;  %s1664_s11 = int_to_ptr.hbm [resolvable:$true] %s1663_s11 }
 0x62b   : > { %1123 = vmax.xlane.f32.xlu2 %v1122_v25 }
 0x643   : > { %1282 = vrot.lane.b32.xlu2 %v2327_v7, %s2170_s12  ;;  %s2094_s12 = sshra.s32 %s1664_s11, 4  ;;  %s2095_s12 = int_to_ptr.hbm [resolvable:$true] %s2094_s12 }
 0x644   : > { %p2101_p11 = scmp.lt.s32.totalorder %s2095_s12, %s2562_s4 }
 0x64b   : > { %1477 = vrot.lane.b32.xlu2 %v2327_v7, %s2172_s26 }
 0x65d   : > { %v943_v26 = vpop.xlane.xlu2 %942 }
 0x65e   : > { %1966 = vrcp.f32 %v943_v26  ;;  %v970_v34 = vand.u32 2147483648, %v943_v26  ;;  %v968_v36 = vand.u32 2147483647, %v943_v26  ;;  %vm964_vm7 = vweird.f32 %v943_v26 }
 0x660   : > { %v971_v40 = vor.u32 1.1754944e-38, %v970_v34  ;;  %vm969_vm9 = vcmp.eq.f32.partialorder %v968_v36, 8.507059e+37 }
 0x661   : > { %v1133_v27 = vpop.xlane.xlu1 %1132 }
 0x662   : > { %1968 = vrcp.f32 %v1133_v27  ;;  %v1148_v44 = vand.u32 2147483648, %v1133_v27  ;;  %vm1142_vm11 = vweird.f32 %v1133_v27  ;;  %v1146_v46 = vand.u32 2147483647, %v1133_v27 }
 0x664   : > { %v1967_v28 = vpop.eup %1966  ;;  %v1149_v51 = vor.u32 1.1754944e-38, %v1148_v44  ;;  %vm1147_vm13 = vcmp.eq.f32.partialorder %v1146_v46, 8.507059e+37 }
 0x665   : > { %v960_v29 = vmul.f32 %v1967_v28, %v943_v26  ;;  %v1001_v30 = vpop.permute.xlu2 %1000  ;;  %vm965_vm6 = vweird.f32 %v1967_v28 }
 0x666   : > { %1021 = vmatpush.msra.mxu0 %v1001_v30  ;;  %vm966_vm8 = vmor %vm964_vm7, %vm965_vm6  ;;  %v2481_v30 = vpop.f32.mrf.mxu3 }
 0x667   : > { %v961_v32 = vsub.f32 1.0, %v960_v29 }
 0x668   : > { %1188 = vmatpush.msrb.mxu0 %v1168_v31  ;;  %v1969_v33 = vpop.eup %1968 }
 0x669   : > { %v962_v35 = vmul.f32 %v1967_v28, %v961_v32  ;;  %v1138_v37 = vmul.f32 %v1969_v33, %v1133_v27  ;;  %vm1143_vm10 = vweird.f32 %v1969_v33 }
 0x66a   : > { %vm1144_vm12 = vmor %vm1142_vm11, %vm1143_vm10 }
 0x66b   : > { %v963_v38 = vadd.f32 %v1967_v28, %v962_v35  ;;  %v1139_v39 = vsub.f32 1.0, %v1138_v37 }
 0x66d   : > { %v967_v41 = vsel %vm966_vm8, %v1967_v28, %v963_v38  ;;  %v1140_v42 = vmul.f32 %v1969_v33, %v1139_v39 }
 0x66e   : > { %v972_v43 = vsel %vm969_vm9, %v971_v40, %v967_v41 }
 0x66f   : > { %v1141_v45 = vadd.f32 %v1969_v33, %v1140_v42  ;;  %v973_v49 = vmul.f32 %v1963_v19, %v972_v43 }
 0x671   : > { %v1145_v50 = vsel %vm1144_vm12, %v1969_v33, %v1141_v45  ;;  %1804 = vmatmul.msk.f32.vlgmr.msra.gmra.mxu0 %vm350_vm3, %v973_v49 }
 0x672   : > { %v1150_v52 = vsel %vm1147_vm13, %v1149_v51, %v1145_v50 }
 0x673   : > { %v1151_v53 = vmul.f32 %v1965_v21, %v1150_v52 }
 0x679   : > { %v1257_v54 = vpop.permute.xlu1 %1256  ;;  %1812 = vmatmul.msk.f32.vlgmr.msrb.gmra.mxu0 %vm350_vm3, %v1151_v53 }
 0x67a   : > { %1817 = vmatpush.xpose.msk.msra.mxu0 %vm296_vm2, %v1257_v54 }
 0x681   : > { %v1194_v56 = vpop.permute.xlu1 %1193  ;;  %1818 = vmatmul.msk.f32.vlgmr.msra.gmra.mxu0 %vm296_vm2, %v1255_v55 }
 0x682   : > { %1214 = vmatpush.msrb.mxu1 %v1194_v56 }
 0x69e   : > { %v1124_v58 = vpop.xlane.xlu2 %1123 }
 0x69f   : > { %v1126_v59 = vsub.f32 %v1118_v24, %v1124_v58 }
 0x6a1   : > { %v1129_v60 = vmul.f32 1.442695, %v1126_v59 }
 0x6a3   : > { %1970 = vpow2.f32 %v1129_v60 }
 0x6a6   : > { %v1283_v61 = vpop.permute.xlu2 %1282 }
 0x6a9   : > { %v1971_v62 = vpop.eup %1970 }
 0x6aa   : > { %v1134_v63 = vsel %vm350_vm3, %v1971_v62, 0.0 }
 0x6ab   : > { %1135 = vadd.xlane.f32.xlu0 %v1134_v63 }
 0x6ae   : > { %v1478_v1 = vpop.permute.xlu2 %1477 }
 0x6af   : > { %1828 = vmatpush.xpose.msk.msrb.mxu2 %vm296_vm2, %v1478_v1 }
 0x6bf   : > { %1284 = vrot.lane.b32.xlu0 %v2327_v7, %s2171_s21  ;;  %s2096_s21 = scalar_lea.hbm %s2095_s12, 16 }
 0x6c0   : > { %p2097_p1 = scmp.ne.s32.totalorder %s2095_s12, %s2096_s21 }
 0x6c2   : > { %p2098_p4 = pnand %p2097_p1, %p2275_p3 }
 0x6c4   : > { %p2099_p8 = pneg %p2098_p4 }
 0x6c7   : > { %1449 = vrot.lane.b32.xlu0 %v2323_v6, %s2172_s26 }
 0x6cf   : > { %1447 = vrot.lane.b32.xlu0 %v2323_v6, %s2173_s6 }
 0x6ee   : > { %v1023_v0 = vpop.f32.mrf.mxu0 }
 0x6ef   : > { %1807 = vmatmul.msk.f32.gmra.mxu3 %vm296_vm2, %v1023_v0 }
 0x6f6   : > { %v1190_v2 = vpop.f32.mrf.mxu0 }
 0x6f7   : > { %1815 = vmatmul.msk.f32.vlgmr.msra.gmra.mxu2 %vm296_vm2, %v1190_v2 }
 0x6fe   : > { %v1279_v3 = vpop.f32.mrf.mxu0 }
 0x6ff   : > { %v1310_v4 = vmul.f32 0.5, %v1279_v3 }
 0x701   : > { %v1312_v5 = vsel %vm350_vm3, %v1310_v4, -inf }
 0x702   : > { %1313 = vmax.xlane.f32.xlu1 %v1312_v5 }
 0x71b   : > { %1360 = vrot.lane.b32.xlu1 %v2323_v6, %s2174_s7 }
 0x71e   : > { %v1136_v8 = vpop.xlane.xlu0 %1135 }
 0x71f   : > { %1972 = vrcp.f32 %v1136_v8  ;;  %v1163_v13 = vand.u32 2147483648, %v1136_v8  ;;  %v1161_v15 = vand.u32 2147483647, %v1136_v8  ;;  %vm1157_vm15 = vweird.f32 %v1136_v8 }
 0x721   : > { %v1164_v18 = vor.u32 1.1754944e-38, %v1163_v13  ;;  %vm1162_vm4 = vcmp.eq.f32.partialorder %v1161_v15, 8.507059e+37 }
 0x725   : > { %v1973_v10 = vpop.eup %1972 }
 0x726   : > { %v1153_v11 = vmul.f32 %v1973_v10, %v1136_v8  ;;  %vm1158_vm14 = vweird.f32 %v1973_v10 }
 0x727   : > { %vm1159_vm1 = vmor %vm1157_vm15, %vm1158_vm14 }
 0x728   : > { %v1154_v12 = vsub.f32 1.0, %v1153_v11 }
 0x72a   : > { %v1155_v14 = vmul.f32 %v1973_v10, %v1154_v12 }
 0x72c   : > { %v1156_v16 = vadd.f32 %v1973_v10, %v1155_v14 }
 0x72e   : > { %v1160_v19 = vsel %vm1159_vm1, %v1973_v10, %v1156_v16 }
 0x72f   : > { %v1165_v20 = vsel %vm1162_vm4, %v1164_v18, %v1160_v19 }
 0x730   : > { %v1166_v21 = vmul.f32 %v1971_v62, %v1165_v20 }
 0x731   : > { %v1285_v22 = vpop.permute.xlu0 %1284 }
 0x732   : > { %1813 = vmatmul.msk.f32.vlgmr.msrb.gmra.mxu1 %vm350_vm3, %v1166_v21  ;;  %1819 = vmatpush.xpose.msk.msrb.mxu3 %vm296_vm2, %v1285_v22 }
 0x735   : > { %1820 = vmatmul.msk.f32.vlgmr.msrb.gmra.mxu3 %vm296_vm2, %v1283_v61 }
 0x736   : > { %1823 = vmatpush.msk.msra.mxu3 %vm266_vm0, %v1412_v57 }
 0x739   : > { %v1450_v29 = vpop.permute.xlu0 %1449 }
 0x741   : > { %v1448_v51 = vpop.permute.xlu0 %1447 }
 0x772   : > { %v2483_v32 = vpop.f32.mrf.mxu3 }
 0x775   : > { %v1314_v23 = vpop.xlane.xlu1 %1313 }
 0x776   : > { %v1318_v24 = vsub.f32 %v1310_v4, %v1314_v23 }
 0x778   : > { %v1320_v25 = vmul.f32 1.442695, %v1318_v24 }
 0x77a   : > { %1974 = vpow2.f32 %v1320_v25  ;;  %v2494_v58 = vpop.f32.mrf.mxu2 }
 0x780   : > { %v1975_v26 = vpop.eup %1974 }
 0x781   : > { %v1324_v27 = vsel %vm350_vm3, %v1975_v26, 0.0 }
 0x782   : > { %1325 = vadd.xlane.f32.xlu2 %v1324_v27 }
 0x78d   : > { %v1361_v28 = vpop.permute.xlu1 %1360 }
 0x78e   : > { %1381 = vmatpush.msra.mxu1 %v1361_v28 }
 0x790   : > { %1826 = vmatpush.xpose.msk.msrb.mxu1 %vm296_vm2, %v1450_v29 }
 0x79a   : > { %1475 = vrot.lane.b32.xlu2 %v2327_v7, %s2173_s6  ;;  %s2100_s6 = scalar_lea.hbm %s2562_s4, 32 }
 0x79b   : > { %p2102_p2 = scmp.lt.s32.totalorder %s2100_s6, %s2096_s21 }
 0x79d   : > { %p2103_p9 = por %p2102_p2, %p2101_p11 }
 0x79f   : > { %p2104_p10 = pnand %p2103_p9, %p2099_p8 }
 0x7af   : > { %v1216_v31 = vpop.f32.mrf.mxu1 }
 0x7b0   : > { %1816 = vmatmul.msk.f32.gmra.mxu2 %vm296_vm2, %v1216_v31 }
 0x7b8   : > { %v1307_v33 = vpop.f32.mrf.mxu3 }
 0x7b9   : > { %v1311_v34 = vmul.f32 0.5, %v1307_v33 }
 0x7bb   : > { %v1315_v35 = vsel %vm350_vm3, %v1311_v34, -inf }
 0x7bc   : > { %1316 = vmax.xlane.f32.xlu0 %v1315_v35 }
 0x7f5   : > { %v1326_v36 = vpop.xlane.xlu2 %1325 }
 0x7f6   : > { %1976 = vrcp.f32 %v1326_v36  ;;  %v1341_v41 = vand.u32 2147483648, %v1326_v36  ;;  %v1339_v43 = vand.u32 2147483647, %v1326_v36  ;;  %vm1335_vm6 = vweird.f32 %v1326_v36 }
 0x7f8   : > { %v1342_v45 = vor.u32 1.1754944e-38, %v1341_v41  ;;  %vm1340_vm8 = vcmp.eq.f32.partialorder %v1339_v43, 8.507059e+37 }
 0x7fc   : > { %v1977_v37 = vpop.eup %1976 }
 0x7fd   : > { %v1331_v38 = vmul.f32 %v1977_v37, %v1326_v36  ;;  %v1476_v39 = vpop.permute.xlu2 %1475  ;;  %vm1336_vm5 = vweird.f32 %v1977_v37 }
 0x7fe   : > { %1829 = vmatmul.msk.f32.vlgmr.msrb.gmra.mxu2 %vm296_vm2, %v1476_v39  ;;  %vm1337_vm7 = vmor %vm1335_vm6, %vm1336_vm5 }
 0x7ff   : > { %v1332_v40 = vsub.f32 1.0, %v1331_v38 }
 0x801   : > { %v1333_v42 = vmul.f32 %v1977_v37, %v1332_v40 }
 0x803   : > { %v1334_v44 = vadd.f32 %v1977_v37, %v1333_v42 }
 0x805   : > { %v1338_v46 = vsel %vm1337_vm7, %v1977_v37, %v1334_v44 }
 0x806   : > { %v1343_v49 = vsel %vm1340_vm8, %v1342_v45, %v1338_v46 }
 0x807   : > { %v1344_v50 = vmul.f32 %v1975_v26, %v1343_v49 }
 0x809   : > { %1821 = vmatmul.msk.f32.vlgmr.msra.gmra.mxu1 %vm350_vm3, %v1344_v50 }
 0x811   : > { %1827 = vmatmul.msk.f32.vlgmr.msrb.gmra.mxu1 %vm296_vm2, %v1448_v51 }
 0x82f   : > { %v1317_v52 = vpop.xlane.xlu0 %1316 }
 0x830   : > { %v1319_v53 = vsub.f32 %v1311_v34, %v1317_v52 }
 0x832   : > { %v1322_v54 = vmul.f32 1.442695, %v1319_v53 }
 0x833   : > { %v2496_v59 = vpop.f32.mrf.mxu2 }
 0x834   : > { %1978 = vpow2.f32 %v1322_v54 }
 0x83a   : > { %v1979_v55 = vpop.eup %1978 }
 0x83b   : > { %v1327_v56 = vsel %vm350_vm3, %v1979_v55, 0.0 }
 0x83c   : > { %1328 = vadd.xlane.f32.xlu0 %v1327_v56 }
 0x850   : > { %1386 = vrot.lane.b32.xlu0 %v2327_v7, %s2174_s7 }
 0x881   : > { %v1500_v60 = vpop.f32.mrf.mxu2 }
 0x882   : > { %v1504_v61 = vmul.f32 0.5, %v1500_v60 }
 0x884   : > { %v1508_v62 = vsel %vm350_vm3, %v1504_v61, -inf }
 0x885   : > { %1509 = vmax.xlane.f32.xlu2 %v1508_v62 }
 0x886   : > { %v1383_v63 = vpop.f32.mrf.mxu1 }
 0x887   : > { %1824 = vmatmul.msk.f32.vlgmr.msra.gmra.mxu3 %vm296_vm2, %v1383_v63 }
 0x88e   : > { %v1472_v1 = vpop.f32.mrf.mxu1 }
 0x88f   : > { %v1503_v0 = vmul.f32 0.5, %v1472_v1  ;;  %v1059_v1 = vadd.f32 %v2481_v30, %v2441_v17 }
 0x891   : > { %v1505_v2 = vsel %vm350_vm3, %v1503_v0, -inf }
 0x892   : > { %1506 = vmax.xlane.f32.xlu1 %v1505_v2  ;;  %v1252_v2 = vadd.f32 %v2494_v58, %v1059_v1 }
 0x8af   : > { %v1329_v3 = vpop.xlane.xlu0 %1328 }
 0x8b0   : > { %1980 = vrcp.f32 %v1329_v3  ;;  %v1356_v10 = vand.u32 2147483648, %v1329_v3  ;;  %v1354_v12 = vand.u32 2147483647, %v1329_v3  ;;  %vm1350_vm10 = vweird.f32 %v1329_v3 }
 0x8b2   : > { %v1357_v14 = vor.u32 1.1754944e-38, %v1356_v10  ;;  %vm1355_vm12 = vcmp.eq.f32.partialorder %v1354_v12, 8.507059e+37 }
 0x8b6   : > { %v1981_v4 = vpop.eup %1980 }
 0x8b7   : > { %v1346_v5 = vmul.f32 %v1981_v4, %v1329_v3  ;;  %vm1351_vm9 = vweird.f32 %v1981_v4  ;;  %v673_v3 = vadd.f32 %v2389_v48, %v2438_v9 }
 0x8b8   : > { %vm1352_vm11 = vmor %vm1350_vm10, %vm1351_vm9 }
 0x8b9   : > { %v1347_v8 = vsub.f32 1.0, %v1346_v5  ;;  %v1933_v5 = vld [vmem:[%s2561_s3] ss:$0 sm:$0xff]  ;;  %v867_v10 = vadd.f32 %v2450_v47, %v673_v3 }
 0x8bb   : > { %v1348_v11 = vmul.f32 %v1981_v4, %v1347_v8  ;;  %v1060_v12 = vadd.f32 %v2483_v32, %v867_v10 }
 0x8bd   : > { %v1349_v13 = vadd.f32 %v1981_v4, %v1348_v11  ;;  %v1253_v48 = vadd.f32 %v2496_v59, %v1060_v12 }
 0x8bf   : > { %v1353_v15 = vsel %vm1352_vm11, %v1981_v4, %v1349_v13 }
 0x8c0   : > { %v1358_v16 = vsel %vm1355_vm12, %v1357_v14, %v1353_v15 }
 0x8c1   : > { %v1359_v18 = vmul.f32 %v1979_v55, %v1358_v16 }
 0x8c2   : > { %v1387_v19 = vpop.permute.xlu0 %1386 }
 0x8c3   : > { %1407 = vmatpush.msrb.mxu0 %v1387_v19 }
 0x8c4   : > { %1822 = vmatmul.msk.f32.vlgmr.msrb.gmra.mxu0 %vm350_vm3, %v1359_v18 }
 0x8f8   : > { %v1510_v20 = vpop.xlane.xlu2 %1509 }
 0x8f9   : > { %v1512_v21 = vsub.f32 %v1504_v61, %v1510_v20  ;;  %v1605_v61 = vld [vmem:[#allocation7 + $0x18] sm:$0xf] }
 0x8fa   : > { %1832 = vmatpush.msk.msra.mxu2 %vm266_vm0, %v1605_v61 }
 0x8fb   : > { %v1515_v22 = vmul.f32 1.442695, %v1512_v21 }
 0x8fd   : > { %1982 = vpow2.f32 %v1515_v22 }
 0x903   : > { %v1983_v23 = vpop.eup %1982 }
 0x904   : > { %v1520_v24 = vsel %vm350_vm3, %v1983_v23, 0.0 }
 0x905   : > { %1521 = vadd.xlane.f32.xlu2 %v1520_v24  ;;  %v1507_v25 = vpop.xlane.xlu1 %1506 }
 0x906   : > { %v1511_v26 = vsub.f32 %v1503_v0, %v1507_v25 }
 0x908   : > { %v1513_v27 = vmul.f32 1.442695, %v1511_v26 }
 0x90a   : > { %1984 = vpow2.f32 %v1513_v27  ;;  %v1439_v0 = vpop.f32.mrf.mxu3 }
 0x90b   : > { %v1445_v4 = vadd.f32 %v1439_v0, %v1252_v2 }
 0x910   : > { %v1985_v28 = vpop.eup %1984 }
 0x911   : > { %v1517_v29 = vsel %vm350_vm3, %v1985_v28, 0.0 }
 0x912   : > { %1518 = vadd.xlane.f32.xlu1 %v1517_v29 }
 0x91d   : > { %1579 = vrot.lane.b32.xlu2 %v2327_v7, %s2175_s30 }
 0x92b   : > { %1553 = vrot.lane.b32.xlu1 %v2323_v6, %s2175_s30 }
 0x941   : > { %v1409_v31 = vpop.f32.mrf.mxu0 }
 0x942   : > { %1825 = vmatmul.msk.f32.gmra.mxu3 %vm296_vm2, %v1409_v31 }
 0x978   : > { %v1522_v33 = vpop.xlane.xlu2 %1521 }
 0x979   : > { %1986 = vrcp.f32 %v1522_v33  ;;  %v1549_v38 = vand.u32 2147483648, %v1522_v33  ;;  %v1547_v40 = vand.u32 2147483647, %v1522_v33  ;;  %vm1543_vm14 = vweird.f32 %v1522_v33 }
 0x97b   : > { %v1550_v6 = vor.u32 1.1754944e-38, %v1549_v38  ;;  %vm1548_vm1 = vcmp.eq.f32.partialorder %v1547_v40, 8.507059e+37 }
 0x97f   : > { %v1987_v34 = vpop.eup %1986 }
 0x980   : > { %v1539_v35 = vmul.f32 %v1987_v34, %v1522_v33  ;;  %v1580_v36 = vpop.permute.xlu2 %1579  ;;  %vm1544_vm13 = vweird.f32 %v1987_v34 }
 0x981   : > { %1600 = vmatpush.msra.mxu1 %v1580_v36  ;;  %vm1545_vm15 = vmor %vm1543_vm14, %vm1544_vm13 }
 0x982   : > { %v1540_v37 = vsub.f32 1.0, %v1539_v35 }
 0x984   : > { %v1541_v39 = vmul.f32 %v1987_v34, %v1540_v37 }
 0x985   : > { %v1519_v41 = vpop.xlane.xlu1 %1518 }
 0x986   : > { %v1542_v42 = vadd.f32 %v1987_v34, %v1541_v39  ;;  %1988 = vrcp.f32 %v1519_v41  ;;  %v1534_v52 = vand.u32 2147483648, %v1519_v41  ;;  %vm1528_vm5 = vweird.f32 %v1519_v41 }
 0x987   : > { %v1532_v53 = vand.u32 2147483647, %v1519_v41 }
 0x988   : > { %v1546_v7 = vsel %vm1545_vm15, %v1987_v34, %v1542_v42  ;;  %v1535_v55 = vor.u32 1.1754944e-38, %v1534_v52 }
 0x989   : > { %v1551_v43 = vsel %vm1548_vm1, %v1550_v6, %v1546_v7  ;;  %vm1533_vm7 = vcmp.eq.f32.partialorder %v1532_v53, 8.507059e+37 }
 0x98a   : > { %v1552_v44 = vmul.f32 %v1983_v23, %v1551_v43 }
 0x98c   : > { %v1989_v45 = vpop.eup %1988  ;;  %1831 = vmatmul.msk.f32.vlgmr.msra.gmra.mxu1 %vm350_vm3, %v1552_v44 }
 0x98d   : > { %v1524_v46 = vmul.f32 %v1989_v45, %v1519_v41  ;;  %vm1529_vm4 = vweird.f32 %v1989_v45 }
 0x98e   : > { %vm1530_vm6 = vmor %vm1528_vm5, %vm1529_vm4 }
 0x98f   : > { %v1525_v49 = vsub.f32 1.0, %v1524_v46 }
 0x991   : > { %v1526_v50 = vmul.f32 %v1989_v45, %v1525_v49 }
 0x993   : > { %v1527_v51 = vadd.f32 %v1989_v45, %v1526_v50 }
 0x995   : > { %v1531_v54 = vsel %vm1530_vm6, %v1989_v45, %v1527_v51 }
 0x996   : > { %v1536_v56 = vsel %vm1533_vm7, %v1535_v55, %v1531_v54 }
 0x997   : > { %v1537_v60 = vmul.f32 %v1985_v28, %v1536_v56 }
 0x99d   : > { %v1554_v57 = vpop.permute.xlu1 %1553 }
 0x99e   : > { %1574 = vmatpush.msra.mxu0 %v1554_v57 }
 0x99f   : > { %1830 = vmatmul.msk.f32.vlgmr.msra.gmra.mxu0 %vm350_vm3, %v1537_v60 }
 0x9c5   : > { %v1442_v30 = vpop.f32.mrf.mxu3 }
 0x9c6   : > { %v1446_v9 = vadd.f32 %v1442_v30, %v1253_v48 }
 0xa09   : > { %v1602_v63 = vpop.f32.mrf.mxu1 }
 0xa1c   : > { %v1576_v62 = vpop.f32.mrf.mxu0 }
 0xa1d   : > { %1833 = vmatmul.msk.f32.vlgmr.msra.gmra.mxu2 %vm296_vm2, %v1576_v62 }
 0xa25   : > { %1834 = vmatmul.msk.f32.gmra.mxu2 %vm296_vm2, %v1602_v63 }
 0xaa0   : > { %v1632_v8 = vpop.f32.mrf.mxu2 }
 0xaa1   : > { %v1638_v11 = vadd.f32 %v1632_v8, %v1445_v4 }
 0xaa3   : > { %v1644_v17 = vadd.f32 %v1933_v5, %v1638_v11 }
 0xaa5   : > { %1646 = vst [vmem:[%s250_s27] sm:$0xff] %v1644_v17 }
 0xaa8   : > { %v1635_v47 = vpop.f32.mrf.mxu2 }
 0xaa9   : > { %v1639_v58 = vadd.f32 %v1635_v47, %v1446_v9 }
 0xaab   : > { %v1645_v32 = vadd.f32 %v1933_v5, %v1639_v58 }
 0xaad   : > { %1647 = vst [vmem:[%s250_s27 + $0x8] sm:$0xff] %v1645_v32 }
 0xaae   : > { %2107 = shalt.err (!%p2104_p10)
}
 0xaaf   : > { %s2176_s20 = smov 128   ;;  %s2177_s5 = smov 8  }
 0xab0   : > { %1852 = dma.vmem_to_hbm [thread:$0]  (%p2275_p3), %s1662_s28, 256, %s1664_s11, %s1649_s19, %s2176_s20, %s2176_s20, %s2177_s5  }
 0xab1 PF: > { %s1678_s8 = sand.u32 1, %s2138_s15   ;;  %p2568_p12 = scmp.ge.s32.totalorder %s2150_s18, 2 }
 0xab2   : > { %s1679_s9 = scalar_lea.sflag [#allocation4], %s1678_s8 }
 0xab3   : > { %p1866_p13 = pnand %p2568_p12, %p2238_p6 }
 0xab5   : > { %p1867_p0 = pneg %p1866_p13 }
 0xab7   : > { %2133 = dma.done.wait (%p1867_p0), %s1679_s9, 256  }
 0xab8   : > { %2135 = vsyncadd (%p1867_p0), %s1679_s9, 4294967040  ;;  %p18_p5 = scmp.ge.s32.totalorder %s2265_s10, 4   ;;  %s2569_s15 = smov %s2142_s16 }
 0xab9   : > { %s2570_s16 = smov %s2146_s17  ;;  %s2571_s17 = smov %s2281_s14 }
 0xaba   : > { %s2572_s18 = smov %s2265_s10  ;;  %20 = sbr.rel (!%p18_p5) target bundleno = 6 (0x6), region = 89 }
 0xabf   :  { %1685 = vsyncpa [#allocation3], 1 }
 0xac0   :  { %1687 = vsyncpa [#allocation3 + $0x1], 1 }
 0xac1   :  { %1688 = vsyncpa [#allocation6], 1 }
 0xac2   :  { %1689 = vsyncpa [#allocation4], 1 }
 0xac3   :  { %1691 = vsyncpa [#allocation4 + $0x1], 1 }

</bundles_post_ra>
